<compile_context>
chip_gen: v7x
topology: tpu7x:2x2x1
jax: 0.10.0
libtpu: 0.0.40
codegen_flags: <defaults>
</compile_context>

<pallas_src>
import jax
import jax.numpy as jnp
from jax.experimental import pallas as pl
from jax.experimental.pallas import tpu as pltpu

N_EMBD = 64
N_HEAD = 4
HEAD_SIZE = N_EMBD // N_HEAD
BLOCK_SIZE = 32
LN_EPS = 1e-5


def _layernorm(h, w, b):
    mu = jnp.mean(h, axis=-1, keepdims=True)
    var = jnp.mean((h - mu) ** 2, axis=-1, keepdims=True)
    return (h - mu) * jax.lax.rsqrt(var + LN_EPS) * w + b


def block_kernel(x_ref, bias_ref, ln1w_ref, ln1b_ref, wqkv_ref, wproj_ref,
                 bproj_ref, ln2w_ref, ln2b_ref, w1_ref, b1_ref, w2_ref, b2_ref,
                 out_ref):
    Bt, T, C = x_ref.shape
    H, hs = N_HEAD, HEAD_SIZE
    M = Bt * T

    x = x_ref[...].reshape(M, C)                       # flatten batch tile into M rows

    # ---- multi-head causal self-attention on ln1(x) ----
    h1 = _layernorm(x, ln1w_ref[...], ln1b_ref[...])
    qkv = jnp.dot(h1, wqkv_ref[...], preferred_element_type=jnp.float32)   # (M, 3C)
    q3 = qkv[:, 0 * C:1 * C].reshape(Bt, T, C)
    k3 = qkv[:, 1 * C:2 * C].reshape(Bt, T, C)
    v3 = qkv[:, 2 * C:3 * C].reshape(Bt, T, C)

    # Gather heads into the (leading) batch dim once: group index g = h*Bt + b.
    def split_heads(t):                                 # (Bt, T, C) -> (H*Bt, T, hs)
        return jnp.concatenate(
            [t[:, :, h * hs:(h + 1) * hs] for h in range(H)], axis=0)

    qh = split_heads(q3)
    kh = split_heads(k3)
    vh = split_heads(v3)

    scale = float(C) ** -0.5        # reference scales by n_embd**-0.5 (not head_size)
    s = jnp.einsum('gqd,gkd->gqk', qh, kh,
                   preferred_element_type=jnp.float32) * scale             # (HB, T, T)
    s = s + bias_ref[...]                                # additive causal mask (0 / -1e30)
    s = s - jnp.max(s, axis=-1, keepdims=True)
    p = jnp.exp(s)
    p = p * pl.reciprocal(jnp.sum(p, axis=-1, keepdims=True), approx=False)
    o = jnp.einsum('gqk,gkd->gqd', p, vh,
                   preferred_element_type=jnp.float32)                     # (HB, T, hs)

    # Re-assemble heads along lanes, then one projection matmul.
    sa = jnp.concatenate([o[h * Bt:(h + 1) * Bt] for h in range(H)], axis=-1)  # (Bt,T,C)
    sa = sa.reshape(M, C)
    sa = jnp.dot(sa, wproj_ref[...], preferred_element_type=jnp.float32) + bproj_ref[...]
    x = x + sa

    # ---- feed-forward on ln2(x) ----
    h2 = _layernorm(x, ln2w_ref[...], ln2b_ref[...])
    ff = jnp.dot(h2, w1_ref[...], preferred_element_type=jnp.float32) + b1_ref[...]
    ff = jnp.maximum(ff, 0.0)
    ff = jnp.dot(ff, w2_ref[...], preferred_element_type=jnp.float32) + b2_ref[...]

    out_ref[...] = (x + ff).reshape(Bt, T, C)


def pallas_block(x, params, batch_tile=None):
    (ln1w, ln1b, wq, wk, wv, wproj, bproj, ln2w, ln2b, w1, b1, w2, b2) = params
    B, T, C = x.shape

    # Batch tile: aim for ~256 rows per grid step (fills the MXU M dim and
    # amortizes per-step overhead).  For the B=2 test this is the whole batch.
    # TODO(synk): on v7x with larger B, cap batch_tile at B//2 so both
    # TensorCores get grid steps.
    if batch_tile is None:
        batch_tile = min(B, max(1, 256 // T))
    while B % batch_tile != 0:
        batch_tile -= 1
    Bt = batch_tile
    grid = (B // Bt,)

    # Host-side packing: fused QKV weight and precomputed additive causal mask.
    wqkv = jnp.concatenate([wq, wk, wv], axis=1)                         # (C, 3C)
    tri = jnp.tril(jnp.ones((T, T), jnp.float32))
    mask_bias = jnp.where(tri > 0.0, 0.0, -1e30).astype(jnp.float32)     # (T, T)

    def wspec(shape):
        nd = len(shape)
        # Constant blocks; default double-buffering is accepted (VMEM is tiny here).
        return pl.BlockSpec(shape, lambda i, _nd=nd: (0,) * _nd)

    in_specs = [
        pl.BlockSpec((Bt, T, C), lambda i: (i, 0, 0)),   # x, Bt batch elements per step
        wspec((T, T)),                                   # causal additive mask
        wspec((1, C)), wspec((1, C)),                    # ln1 w, b
        wspec((C, 3 * C)),                               # fused Wqkv
        wspec((C, C)), wspec((1, C)),                    # Wproj, bproj
        wspec((1, C)), wspec((1, C)),                    # ln2 w, b
        wspec((C, 4 * C)), wspec((1, 4 * C)),            # W1, b1
        wspec((4 * C, C)), wspec((1, C)),                # W2, b2
    ]
    out_spec = pl.BlockSpec((Bt, T, C), lambda i: (i, 0, 0))

    # Advisory cost estimate for XLA's scheduler.
    flops_per_elem = (2 * T * C * 3 * C                       # fused QKV
                      + 2 * N_HEAD * T * T * HEAD_SIZE * 2    # QK^T and P@V
                      + 2 * T * C * C                         # output proj
                      + 2 * T * C * 4 * C * 2)                # MLP
    flops = B * flops_per_elem
    transcendentals = B * N_HEAD * T * T                      # exp in softmax
    weight_bytes = 4 * (C * 3 * C + C * C + C * 4 * C + 4 * C * C
                        + 4 * C + 4 * C + 4 * C + T * T)
    bytes_accessed = 4 * 2 * B * T * C + weight_bytes

    return pl.pallas_call(
        block_kernel,
        out_shape=jax.ShapeDtypeStruct((B, T, C), jnp.float32),
        grid_spec=pltpu.PrefetchScalarGridSpec(
            num_scalar_prefetch=0, grid=grid,
            in_specs=in_specs, out_specs=out_spec),
        compiler_params=pltpu.CompilerParams(dimension_semantics=("parallel",)),
        cost_estimate=pl.CostEstimate(flops=flops,
                                      transcendentals=transcendentals,
                                      bytes_accessed=bytes_accessed),
    )(x, mask_bias, ln1w, ln1b, wqkv, wproj, bproj, ln2w, ln2b, w1, b1, w2, b2)


def init_params(key):
    ks = jax.random.split(key, 9)
    C = N_EMBD

    def lin(k, fin, fout):
        return jax.random.normal(k, (fin, fout), jnp.float32) * 0.02

    ln1w = jnp.ones((1, C), jnp.float32); ln1b = jnp.zeros((1, C), jnp.float32)
    ln2w = jnp.ones((1, C), jnp.float32); ln2b = jnp.zeros((1, C), jnp.float32)
    wq = lin(ks[0], C, C); wk = lin(ks[1], C, C); wv = lin(ks[2], C, C)
    wproj = lin(ks[3], C, C)
    bproj = jax.random.normal(ks[4], (1, C), jnp.float32) * 0.02
    w1 = lin(ks[5], C, 4 * C)
    b1 = jax.random.normal(ks[6], (1, 4 * C), jnp.float32) * 0.02
    w2 = lin(ks[7], 4 * C, C)
    b2 = jax.random.normal(ks[8], (1, C), jnp.float32) * 0.02
    return (ln1w, ln1b, wq, wk, wv, wproj, bproj, ln2w, ln2b, w1, b1, w2, b2)


def reference_block(x, params):
    (ln1w, ln1b, wq, wk, wv, wproj, bproj, ln2w, ln2b, w1, b1, w2, b2) = params
    B, T, C = x.shape

    def ln(h, w, b):
        mu = h.mean(-1, keepdims=True)
        var = ((h - mu) ** 2).mean(-1, keepdims=True)
        return (h - mu) / jnp.sqrt(var + LN_EPS) * w[0] + b[0]

    h1 = ln(x, ln1w, ln1b)
    q = h1 @ wq; k = h1 @ wk; v = h1 @ wv
    causal = jnp.tril(jnp.ones((T, T), bool))
    heads = []
    for h_ in range(N_HEAD):
        sl = slice(h_ * HEAD_SIZE, (h_ + 1) * HEAD_SIZE)
        wei = (q[..., sl] @ jnp.swapaxes(k[..., sl], -1, -2)) * (C ** -0.5)
        wei = jnp.where(causal, wei, -jnp.inf)
        wei = jax.nn.softmax(wei, axis=-1)
        heads.append(wei @ v[..., sl])
    sa = jnp.concatenate(heads, -1) @ wproj + bproj[0]
    x = x + sa
    h2 = ln(x, ln2w, ln2b)
    ff = jnp.maximum(h2 @ w1 + b1[0], 0.0) @ w2 + b2[0]
    return x + ff


if __name__ == "__main__":
    key = jax.random.PRNGKey(0)
    kx, kp = jax.random.split(key)
    B, T, C = 2, BLOCK_SIZE, N_EMBD          # (2, 32, 64)
    x = jax.random.normal(kx, (B, T, C), jnp.float32)
    params = init_params(kp)

    out = pallas_block(x, params)
    out = jax.block_until_ready(out)

    ref = reference_block(x, params)
    assert out.shape == (B, T, C)
    assert jnp.allclose(out, ref, atol=1e-4, rtol=1e-4)
    print("KERNEL_OK")
</pallas_src>

<mosaic_0001>
module attributes {stable_mosaic.version = 11 : i64} {
  func.func @block_kernel(%arg0: i32, %arg1: memref<2x32x64xf32, #tpu.memory_space<vmem>>, %arg2: memref<32x32xf32, #tpu.memory_space<vmem>>, %arg3: memref<1x64xf32, #tpu.memory_space<vmem>>, %arg4: memref<1x64xf32, #tpu.memory_space<vmem>>, %arg5: memref<64x192xf32, #tpu.memory_space<vmem>>, %arg6: memref<64x64xf32, #tpu.memory_space<vmem>>, %arg7: memref<1x64xf32, #tpu.memory_space<vmem>>, %arg8: memref<1x64xf32, #tpu.memory_space<vmem>>, %arg9: memref<1x64xf32, #tpu.memory_space<vmem>>, %arg10: memref<64x256xf32, #tpu.memory_space<vmem>>, %arg11: memref<1x256xf32, #tpu.memory_space<vmem>>, %arg12: memref<256x64xf32, #tpu.memory_space<vmem>>, %arg13: memref<1x64xf32, #tpu.memory_space<vmem>>, %arg14: memref<2x32x64xf32, #tpu.memory_space<vmem>>) attributes {dimension_semantics = [#tpu.dimension_semantics<parallel>], iteration_bounds = array<i64: 1>, scalar_prefetch = 0 : i64, scratch_operands = 0 : i64, tpu.core_type = #tpu.core_type<tc>, window_params = [{transform_indices = @transform_0, window_bounds = array<i64: 2, 32, 64>}, {pipeline_mode = #tpu.pipeline_mode<synchronous>, transform_indices = @transform_1, window_bounds = array<i64: 32, 32>}, {pipeline_mode = #tpu.pipeline_mode<synchronous>, transform_indices = @transform_2, window_bounds = array<i64: 1, 64>}, {pipeline_mode = #tpu.pipeline_mode<synchronous>, transform_indices = @transform_3, window_bounds = array<i64: 1, 64>}, {pipeline_mode = #tpu.pipeline_mode<synchronous>, transform_indices = @transform_4, window_bounds = array<i64: 64, 192>}, {pipeline_mode = #tpu.pipeline_mode<synchronous>, transform_indices = @transform_5, window_bounds = array<i64: 64, 64>}, {pipeline_mode = #tpu.pipeline_mode<synchronous>, transform_indices = @transform_6, window_bounds = array<i64: 1, 64>}, {pipeline_mode = #tpu.pipeline_mode<synchronous>, transform_indices = @transform_7, window_bounds = array<i64: 1, 64>}, {pipeline_mode = #tpu.pipeline_mode<synchronous>, transform_indices = @transform_8, window_bounds = array<i64: 1, 64>}, {pipeline_mode = #tpu.pipeline_mode<synchronous>, transform_indices = @transform_9, window_bounds = array<i64: 64, 256>}, {pipeline_mode = #tpu.pipeline_mode<synchronous>, transform_indices = @transform_10, window_bounds = array<i64: 1, 256>}, {pipeline_mode = #tpu.pipeline_mode<synchronous>, transform_indices = @transform_11, window_bounds = array<i64: 256, 64>}, {pipeline_mode = #tpu.pipeline_mode<synchronous>, transform_indices = @transform_12, window_bounds = array<i64: 1, 64>}, {transform_indices = @transform_13, window_bounds = array<i64: 2, 32, 64>}]} {
    %c0 = arith.constant 0 : index
    %c0_0 = arith.constant 0 : index
    %c0_1 = arith.constant 0 : index
    %0 = vector.load %arg1[%c0, %c0_0, %c0_1] : memref<2x32x64xf32, #tpu.memory_space<vmem>>, vector<2x32x64xf32>
    %1 = vector.shape_cast %0 : vector<2x32x64xf32> to vector<64x64xf32>
    %c0_2 = arith.constant 0 : index
    %c0_3 = arith.constant 0 : index
    %2 = vector.load %arg3[%c0_2, %c0_3] : memref<1x64xf32, #tpu.memory_space<vmem>>, vector<1x64xf32>
    %c0_4 = arith.constant 0 : index
    %c0_5 = arith.constant 0 : index
    %3 = vector.load %arg4[%c0_4, %c0_5] : memref<1x64xf32, #tpu.memory_space<vmem>>, vector<1x64xf32>
    %cst = arith.constant dense<0.000000e+00> : vector<64xf32>
    %4 = vector.multi_reduction <add>, %1, %cst [1] : vector<64x64xf32> to vector<64xf32>
    %5 = vector.shape_cast %4 : vector<64xf32> to vector<64x1xf32>
    %cst_6 = arith.constant 6.400000e+01 : f32
    %6 = vector.broadcast %cst_6 : f32 to vector<64x1xf32>
    %7 = arith.divf %5, %6 : vector<64x1xf32>
    %8 = vector.broadcast %7 : vector<64x1xf32> to vector<64x64xf32>
    %9 = arith.subf %1, %8 : vector<64x64xf32>
    %10 = arith.mulf %9, %9 : vector<64x64xf32>
    %cst_7 = arith.constant dense<0.000000e+00> : vector<64xf32>
    %11 = vector.multi_reduction <add>, %10, %cst_7 [1] : vector<64x64xf32> to vector<64xf32>
    %12 = vector.shape_cast %11 : vector<64xf32> to vector<64x1xf32>
    %cst_8 = arith.constant 6.400000e+01 : f32
    %13 = vector.broadcast %cst_8 : f32 to vector<64x1xf32>
    %14 = arith.divf %12, %13 : vector<64x1xf32>
    %15 = vector.broadcast %7 : vector<64x1xf32> to vector<64x64xf32>
    %16 = arith.subf %1, %15 : vector<64x64xf32>
    %cst_9 = arith.constant 9.99999974E-6 : f32
    %17 = vector.broadcast %cst_9 : f32 to vector<64x1xf32>
    %18 = arith.addf %14, %17 : vector<64x1xf32>
    %19 = math.rsqrt %18 : vector<64x1xf32>
    %20 = vector.broadcast %19 : vector<64x1xf32> to vector<64x64xf32>
    %21 = arith.mulf %16, %20 : vector<64x64xf32>
    %22 = vector.broadcast %2 : vector<1x64xf32> to vector<64x64xf32>
    %23 = arith.mulf %21, %22 : vector<64x64xf32>
    %24 = vector.broadcast %3 : vector<1x64xf32> to vector<64x64xf32>
    %25 = arith.addf %23, %24 : vector<64x64xf32>
    %c0_10 = arith.constant 0 : index
    %c0_11 = arith.constant 0 : index
    %26 = vector.load %arg5[%c0_10, %c0_11] : memref<64x192xf32, #tpu.memory_space<vmem>>, vector<64x192xf32>
    %cst_12 = arith.constant dense<0.000000e+00> : vector<64x192xf32>
    %27 = tpu.matmul %25, %26, %cst_12 {dimension_numbers = #tpu.dot_dimension_numbers<[1], [0], [0], [1], [0, 0, 1, 1], [], []>} : vector<64x64xf32>, vector<64x192xf32>, vector<64x192xf32> -> vector<64x192xf32>
    %28 = vector.extract_strided_slice %27 {offsets = [0, 0], sizes = [64, 64], strides = [1, 1]} : vector<64x192xf32> to vector<64x64xf32>
    %29 = vector.shape_cast %28 : vector<64x64xf32> to vector<2x32x64xf32>
    %30 = vector.extract_strided_slice %27 {offsets = [0, 64], sizes = [64, 64], strides = [1, 1]} : vector<64x192xf32> to vector<64x64xf32>
    %31 = vector.shape_cast %30 : vector<64x64xf32> to vector<2x32x64xf32>
    %32 = vector.extract_strided_slice %27 {offsets = [0, 128], sizes = [64, 64], strides = [1, 1]} : vector<64x192xf32> to vector<64x64xf32>
    %33 = vector.shape_cast %32 : vector<64x64xf32> to vector<2x32x64xf32>
    %34 = vector.extract_strided_slice %29 {offsets = [0, 0, 0], sizes = [2, 32, 16], strides = [1, 1, 1]} : vector<2x32x64xf32> to vector<2x32x16xf32>
    %35 = vector.extract_strided_slice %29 {offsets = [0, 0, 16], sizes = [2, 32, 16], strides = [1, 1, 1]} : vector<2x32x64xf32> to vector<2x32x16xf32>
    %36 = vector.extract_strided_slice %29 {offsets = [0, 0, 32], sizes = [2, 32, 16], strides = [1, 1, 1]} : vector<2x32x64xf32> to vector<2x32x16xf32>
    %37 = vector.extract_strided_slice %29 {offsets = [0, 0, 48], sizes = [2, 32, 16], strides = [1, 1, 1]} : vector<2x32x64xf32> to vector<2x32x16xf32>
    %38 = tpu.concatenate %34, %35, %36, %37 in 0 : vector<2x32x16xf32>, vector<2x32x16xf32>, vector<2x32x16xf32>, vector<2x32x16xf32> -> vector<8x32x16xf32>
    %39 = vector.extract_strided_slice %31 {offsets = [0, 0, 0], sizes = [2, 32, 16], strides = [1, 1, 1]} : vector<2x32x64xf32> to vector<2x32x16xf32>
    %40 = vector.extract_strided_slice %31 {offsets = [0, 0, 16], sizes = [2, 32, 16], strides = [1, 1, 1]} : vector<2x32x64xf32> to vector<2x32x16xf32>
    %41 = vector.extract_strided_slice %31 {offsets = [0, 0, 32], sizes = [2, 32, 16], strides = [1, 1, 1]} : vector<2x32x64xf32> to vector<2x32x16xf32>
    %42 = vector.extract_strided_slice %31 {offsets = [0, 0, 48], sizes = [2, 32, 16], strides = [1, 1, 1]} : vector<2x32x64xf32> to vector<2x32x16xf32>
    %43 = tpu.concatenate %39, %40, %41, %42 in 0 : vector<2x32x16xf32>, vector<2x32x16xf32>, vector<2x32x16xf32>, vector<2x32x16xf32> -> vector<8x32x16xf32>
    %44 = vector.extract_strided_slice %33 {offsets = [0, 0, 0], sizes = [2, 32, 16], strides = [1, 1, 1]} : vector<2x32x64xf32> to vector<2x32x16xf32>
    %45 = vector.extract_strided_slice %33 {offsets = [0, 0, 16], sizes = [2, 32, 16], strides = [1, 1, 1]} : vector<2x32x64xf32> to vector<2x32x16xf32>
    %46 = vector.extract_strided_slice %33 {offsets = [0, 0, 32], sizes = [2, 32, 16], strides = [1, 1, 1]} : vector<2x32x64xf32> to vector<2x32x16xf32>
    %47 = vector.extract_strided_slice %33 {offsets = [0, 0, 48], sizes = [2, 32, 16], strides = [1, 1, 1]} : vector<2x32x64xf32> to vector<2x32x16xf32>
    %48 = tpu.concatenate %44, %45, %46, %47 in 0 : vector<2x32x16xf32>, vector<2x32x16xf32>, vector<2x32x16xf32>, vector<2x32x16xf32> -> vector<8x32x16xf32>
    "tpu.trace_start"() <{level = 10 : i32, message = "gqd,gkd->gqk"}> : () -> ()
    %cst_13 = arith.constant dense<0.000000e+00> : vector<8x32x32xf32>
    %49 = tpu.matmul %38, %43, %cst_13 {dimension_numbers = #tpu.dot_dimension_numbers<[2], [2], [1], [1], [0, 0, 0, 1, 1, 1], [0], [0]>} : vector<8x32x16xf32>, vector<8x32x16xf32>, vector<8x32x32xf32> -> vector<8x32x32xf32>
    "tpu.trace_stop"() : () -> ()
    %cst_14 = arith.constant 1.250000e-01 : f32
    %50 = vector.broadcast %cst_14 : f32 to vector<8x32x32xf32>
    %51 = arith.mulf %49, %50 : vector<8x32x32xf32>
    %c0_15 = arith.constant 0 : index
    %c0_16 = arith.constant 0 : index
    %52 = vector.load %arg2[%c0_15, %c0_16] : memref<32x32xf32, #tpu.memory_space<vmem>>, vector<32x32xf32>
    %53 = vector.shape_cast %52 : vector<32x32xf32> to vector<1x32x32xf32>
    %54 = vector.broadcast %53 : vector<1x32x32xf32> to vector<8x32x32xf32>
    %55 = arith.addf %51, %54 : vector<8x32x32xf32>
    %cst_17 = arith.constant dense<0xFF800000> : vector<8x32xf32>
    %56 = vector.multi_reduction <maximumf>, %55, %cst_17 [2] : vector<8x32x32xf32> to vector<8x32xf32>
    %57 = vector.shape_cast %56 : vector<8x32xf32> to vector<8x32x1xf32>
    %58 = vector.broadcast %57 : vector<8x32x1xf32> to vector<8x32x32xf32>
    %59 = arith.subf %55, %58 : vector<8x32x32xf32>
    %60 = math.exp %59 : vector<8x32x32xf32>
    %cst_18 = arith.constant dense<0.000000e+00> : vector<8x32xf32>
    %61 = vector.multi_reduction <add>, %60, %cst_18 [2] : vector<8x32x32xf32> to vector<8x32xf32>
    %62 = vector.shape_cast %61 : vector<8x32xf32> to vector<8x32x1xf32>
    %63 = tpu.reciprocal %62 : vector<8x32x1xf32> -> vector<8x32x1xf32>
    %64 = vector.broadcast %63 : vector<8x32x1xf32> to vector<8x32x32xf32>
    %65 = arith.mulf %60, %64 : vector<8x32x32xf32>
    "tpu.trace_start"() <{level = 10 : i32, message = "gqk,gkd->gqd"}> : () -> ()
    %cst_19 = arith.constant dense<0.000000e+00> : vector<8x32x16xf32>
    %66 = tpu.matmul %65, %48, %cst_19 {dimension_numbers = #tpu.dot_dimension_numbers<[2], [1], [1], [2], [0, 0, 0, 1, 1, 2], [0], [0]>} : vector<8x32x32xf32>, vector<8x32x16xf32>, vector<8x32x16xf32> -> vector<8x32x16xf32>
    "tpu.trace_stop"() : () -> ()
    %67 = vector.extract_strided_slice %66 {offsets = [0, 0, 0], sizes = [2, 32, 16], strides = [1, 1, 1]} : vector<8x32x16xf32> to vector<2x32x16xf32>
    %68 = vector.extract_strided_slice %66 {offsets = [2, 0, 0], sizes = [2, 32, 16], strides = [1, 1, 1]} : vector<8x32x16xf32> to vector<2x32x16xf32>
    %69 = vector.extract_strided_slice %66 {offsets = [4, 0, 0], sizes = [2, 32, 16], strides = [1, 1, 1]} : vector<8x32x16xf32> to vector<2x32x16xf32>
    %70 = vector.extract_strided_slice %66 {offsets = [6, 0, 0], sizes = [2, 32, 16], strides = [1, 1, 1]} : vector<8x32x16xf32> to vector<2x32x16xf32>
    %71 = tpu.concatenate %67, %68, %69, %70 in 2 : vector<2x32x16xf32>, vector<2x32x16xf32>, vector<2x32x16xf32>, vector<2x32x16xf32> -> vector<2x32x64xf32>
    %72 = vector.shape_cast %71 : vector<2x32x64xf32> to vector<64x64xf32>
    %c0_20 = arith.constant 0 : index
    %c0_21 = arith.constant 0 : index
    %73 = vector.load %arg6[%c0_20, %c0_21] : memref<64x64xf32, #tpu.memory_space<vmem>>, vector<64x64xf32>
    %cst_22 = arith.constant dense<0.000000e+00> : vector<64x64xf32>
    %74 = tpu.matmul %72, %73, %cst_22 {dimension_numbers = #tpu.dot_dimension_numbers<[1], [0], [0], [1], [0, 0, 1, 1], [], []>} : vector<64x64xf32>, vector<64x64xf32>, vector<64x64xf32> -> vector<64x64xf32>
    %c0_23 = arith.constant 0 : index
    %c0_24 = arith.constant 0 : index
    %75 = vector.load %arg7[%c0_23, %c0_24] : memref<1x64xf32, #tpu.memory_space<vmem>>, vector<1x64xf32>
    %76 = vector.broadcast %75 : vector<1x64xf32> to vector<64x64xf32>
    %77 = arith.addf %74, %76 : vector<64x64xf32>
    %78 = arith.addf %1, %77 : vector<64x64xf32>
    %c0_25 = arith.constant 0 : index
    %c0_26 = arith.constant 0 : index
    %79 = vector.load %arg8[%c0_25, %c0_26] : memref<1x64xf32, #tpu.memory_space<vmem>>, vector<1x64xf32>
    %c0_27 = arith.constant 0 : index
    %c0_28 = arith.constant 0 : index
    %80 = vector.load %arg9[%c0_27, %c0_28] : memref<1x64xf32, #tpu.memory_space<vmem>>, vector<1x64xf32>
    %cst_29 = arith.constant dense<0.000000e+00> : vector<64xf32>
    %81 = vector.multi_reduction <add>, %78, %cst_29 [1] : vector<64x64xf32> to vector<64xf32>
    %82 = vector.shape_cast %81 : vector<64xf32> to vector<64x1xf32>
    %cst_30 = arith.constant 6.400000e+01 : f32
    %83 = vector.broadcast %cst_30 : f32 to vector<64x1xf32>
    %84 = arith.divf %82, %83 : vector<64x1xf32>
    %85 = vector.broadcast %84 : vector<64x1xf32> to vector<64x64xf32>
    %86 = arith.subf %78, %85 : vector<64x64xf32>
    %87 = arith.mulf %86, %86 : vector<64x64xf32>
    %cst_31 = arith.constant dense<0.000000e+00> : vector<64xf32>
    %88 = vector.multi_reduction <add>, %87, %cst_31 [1] : vector<64x64xf32> to vector<64xf32>
    %89 = vector.shape_cast %88 : vector<64xf32> to vector<64x1xf32>
    %cst_32 = arith.constant 6.400000e+01 : f32
    %90 = vector.broadcast %cst_32 : f32 to vector<64x1xf32>
    %91 = arith.divf %89, %90 : vector<64x1xf32>
    %92 = vector.broadcast %84 : vector<64x1xf32> to vector<64x64xf32>
    %93 = arith.subf %78, %92 : vector<64x64xf32>
    %cst_33 = arith.constant 9.99999974E-6 : f32
    %94 = vector.broadcast %cst_33 : f32 to vector<64x1xf32>
    %95 = arith.addf %91, %94 : vector<64x1xf32>
    %96 = math.rsqrt %95 : vector<64x1xf32>
    %97 = vector.broadcast %96 : vector<64x1xf32> to vector<64x64xf32>
    %98 = arith.mulf %93, %97 : vector<64x64xf32>
    %99 = vector.broadcast %79 : vector<1x64xf32> to vector<64x64xf32>
    %100 = arith.mulf %98, %99 : vector<64x64xf32>
    %101 = vector.broadcast %80 : vector<1x64xf32> to vector<64x64xf32>
    %102 = arith.addf %100, %101 : vector<64x64xf32>
    %c0_34 = arith.constant 0 : index
    %c0_35 = arith.constant 0 : index
    %103 = vector.load %arg10[%c0_34, %c0_35] : memref<64x256xf32, #tpu.memory_space<vmem>>, vector<64x256xf32>
    %cst_36 = arith.constant dense<0.000000e+00> : vector<64x256xf32>
    %104 = tpu.matmul %102, %103, %cst_36 {dimension_numbers = #tpu.dot_dimension_numbers<[1], [0], [0], [1], [0, 0, 1, 1], [], []>} : vector<64x64xf32>, vector<64x256xf32>, vector<64x256xf32> -> vector<64x256xf32>
    %c0_37 = arith.constant 0 : index
    %c0_38 = arith.constant 0 : index
    %105 = vector.load %arg11[%c0_37, %c0_38] : memref<1x256xf32, #tpu.memory_space<vmem>>, vector<1x256xf32>
    %106 = vector.broadcast %105 : vector<1x256xf32> to vector<64x256xf32>
    %107 = arith.addf %104, %106 : vector<64x256xf32>
    %cst_39 = arith.constant 0.000000e+00 : f32
    %108 = vector.broadcast %cst_39 : f32 to vector<64x256xf32>
    %109 = arith.maximumf %107, %108 : vector<64x256xf32>
    %c0_40 = arith.constant 0 : index
    %c0_41 = arith.constant 0 : index
    %110 = vector.load %arg12[%c0_40, %c0_41] : memref<256x64xf32, #tpu.memory_space<vmem>>, vector<256x64xf32>
    %cst_42 = arith.constant dense<0.000000e+00> : vector<64x64xf32>
    %111 = tpu.matmul %109, %110, %cst_42 {dimension_numbers = #tpu.dot_dimension_numbers<[1], [0], [0], [1], [0, 0, 1, 1], [], []>} : vector<64x256xf32>, vector<256x64xf32>, vector<64x64xf32> -> vector<64x64xf32>
    %c0_43 = arith.constant 0 : index
    %c0_44 = arith.constant 0 : index
    %112 = vector.load %arg13[%c0_43, %c0_44] : memref<1x64xf32, #tpu.memory_space<vmem>>, vector<1x64xf32>
    %113 = vector.broadcast %112 : vector<1x64xf32> to vector<64x64xf32>
    %114 = arith.addf %111, %113 : vector<64x64xf32>
    %115 = arith.addf %78, %114 : vector<64x64xf32>
    %116 = vector.shape_cast %115 : vector<64x64xf32> to vector<2x32x64xf32>
    %c0_45 = arith.constant 0 : index
    %c0_46 = arith.constant 0 : index
    %c0_47 = arith.constant 0 : index
    %117 = vector.load %arg14[%c0_45, %c0_46, %c0_47] : memref<2x32x64xf32, #tpu.memory_space<vmem>>, vector<2x32x64xf32>
    tpu.vector_store %arg14[%c0_45, %c0_46, %c0_47], %116 {strides = array<i32>} : memref<2x32x64xf32, #tpu.memory_space<vmem>>, vector<2x32x64xf32>,
    return
  }
  func.func @transform_0(%arg0: i32) -> (i32, i32, i32) {
    %c0_i32 = arith.constant 0 : i32
    %c0_i32_0 = arith.constant 0 : i32
    %c0_i32_1 = arith.constant 0 : i32
    return %arg0, %c0_i32, %c0_i32_0 : i32, i32, i32
  }
  func.func @transform_1(%arg0: i32) -> (i32, i32) {
    %c0_i32 = arith.constant 0 : i32
    %c0_i32_0 = arith.constant 0 : i32
    %c0_i32_1 = arith.constant 0 : i32
    return %c0_i32, %c0_i32_0 : i32, i32
  }
  func.func @transform_2(%arg0: i32) -> (i32, i32) {
    %c0_i32 = arith.constant 0 : i32
    %c0_i32_0 = arith.constant 0 : i32
    %c0_i32_1 = arith.constant 0 : i32
    return %c0_i32, %c0_i32_0 : i32, i32
  }
  func.func @transform_3(%arg0: i32) -> (i32, i32) {
    %c0_i32 = arith.constant 0 : i32
    %c0_i32_0 = arith.constant 0 : i32
    %c0_i32_1 = arith.constant 0 : i32
    return %c0_i32, %c0_i32_0 : i32, i32
  }
  func.func @transform_4(%arg0: i32) -> (i32, i32) {
    %c0_i32 = arith.constant 0 : i32
    %c0_i32_0 = arith.constant 0 : i32
    %c0_i32_1 = arith.constant 0 : i32
    return %c0_i32, %c0_i32_0 : i32, i32
  }
  func.func @transform_5(%arg0: i32) -> (i32, i32) {
    %c0_i32 = arith.constant 0 : i32
    %c0_i32_0 = arith.constant 0 : i32
    %c0_i32_1 = arith.constant 0 : i32
    return %c0_i32, %c0_i32_0 : i32, i32
  }
  func.func @transform_6(%arg0: i32) -> (i32, i32) {
    %c0_i32 = arith.constant 0 : i32
    %c0_i32_0 = arith.constant 0 : i32
    %c0_i32_1 = arith.constant 0 : i32
    return %c0_i32, %c0_i32_0 : i32, i32
  }
  func.func @transform_7(%arg0: i32) -> (i32, i32) {
    %c0_i32 = arith.constant 0 : i32
    %c0_i32_0 = arith.constant 0 : i32
    %c0_i32_1 = arith.constant 0 : i32
    return %c0_i32, %c0_i32_0 : i32, i32
  }
  func.func @transform_8(%arg0: i32) -> (i32, i32) {
    %c0_i32 = arith.constant 0 : i32
    %c0_i32_0 = arith.constant 0 : i32
    %c0_i32_1 = arith.constant 0 : i32
    return %c0_i32, %c0_i32_0 : i32, i32
  }
  func.func @transform_9(%arg0: i32) -> (i32, i32) {
    %c0_i32 = arith.constant 0 : i32
    %c0_i32_0 = arith.constant 0 : i32
    %c0_i32_1 = arith.constant 0 : i32
    return %c0_i32, %c0_i32_0 : i32, i32
  }
  func.func @transform_10(%arg0: i32) -> (i32, i32) {
    %c0_i32 = arith.constant 0 : i32
    %c0_i32_0 = arith.constant 0 : i32
    %c0_i32_1 = arith.constant 0 : i32
    return %c0_i32, %c0_i32_0 : i32, i32
  }
  func.func @transform_11(%arg0: i32) -> (i32, i32) {
    %c0_i32 = arith.constant 0 : i32
    %c0_i32_0 = arith.constant 0 : i32
    %c0_i32_1 = arith.constant 0 : i32
    return %c0_i32, %c0_i32_0 : i32, i32
  }
  func.func @transform_12(%arg0: i32) -> (i32, i32) {
    %c0_i32 = arith.constant 0 : i32
    %c0_i32_0 = arith.constant 0 : i32
    %c0_i32_1 = arith.constant 0 : i32
    return %c0_i32, %c0_i32_0 : i32, i32
  }
  func.func @transform_13(%arg0: i32) -> (i32, i32, i32) {
    %c0_i32 = arith.constant 0 : i32
    %c0_i32_0 = arith.constant 0 : i32
    %c0_i32_1 = arith.constant 0 : i32
    return %arg0, %c0_i32, %c0_i32_0 : i32, i32, i32
  }
}

</mosaic_0001>

<bundles_post_ra>
// kernel: tpu_custom_call.1
= control target key start
LH: loop header
LB: loop body
LE: loop exit
PB: predicated region body
PF: predicated region fallthrough
CT: control target
= control target key end

     0   :  { %18 = vsyncpa [#allocation3], 0  ;;  %s5941_s0 = inlined_call_operand.vmem [shape: f32[2,32,64], index: 0, kind: input, shape index: {}]   ;;  %s5942_s1 = inlined_call_operand.hbm [shape: f32[32,32], index: 1, kind: input, shape index: {}]   ;;  %s5943_s2 = inlined_call_operand.vmem [shape: f32[1,64], index: 2, kind: input, shape index: {}]   ;;  %s5944_s3 = inlined_call_operand.vmem [shape: f32[1,64], index: 3, kind: input, shape index: {}]   ;;  %s5945_s4 = inlined_call_operand.vmem [shape: f32[64,192], index: 4, kind: input, shape index: {}]   ;;  %s5946_s5 = inlined_call_operand.vmem [shape: f32[64,64], index: 5, kind: input, shape index: {}]   ;;  %s5947_s6 = inlined_call_operand.vmem [shape: f32[1,64], index: 6, kind: input, shape index: {}]   ;;  %s5948_s7 = inlined_call_operand.vmem [shape: f32[1,64], index: 7, kind: input, shape index: {}]   ;;  %s5949_s8 = inlined_call_operand.vmem [shape: f32[1,64], index: 8, kind: input, shape index: {}]   ;;  %s5950_s9 = inlined_call_operand.vmem [shape: f32[64,256], index: 9, kind: input, shape index: {}]   ;;  %s5951_s10 = inlined_call_operand.vmem [shape: f32[1,256], index: 10, kind: input, shape index: {}]   ;;  %s5952_s11 = inlined_call_operand.vmem [shape: f32[256,64], index: 11, kind: input, shape index: {}]   ;;  %s5953_s12 = inlined_call_operand.vmem [shape: f32[1,64], index: 12, kind: input, shape index: {}]   ;;  %s5954_s13 = inlined_call_operand.hbm [shape: f32[2,32,64], index: 13, kind: output, shape index: {}]  }
   0x1   :  { %19 = vsyncpa [#allocation4], 0  ;;  %s4521_s25 = smov [#allocation2]   ;;  %s4473_s29 = scalar_lea.hbm %s5942_s1, 512 }
   0x2   :  { %s27_s26 = sshll.u32 %s4521_s25, 4  ;;  %p4474_p0 = scmp.ne.s32.totalorder %s5942_s1, %s4473_s29  ;;  %s28_s26 = int_to_ptr.vmem [resolvable:$true] %s27_s26 }
   0x3   :  { %p4477_p1 = scmp.lt.u32.totalorder %s4473_s29, %s5942_s1 }
   0x5   :  { %p4479_p2 = pnand %p4477_p1, %p4474_p0 }
   0x7   :  { %4482 = shalt.err (!%p4479_p2)
}
   0x8   :  { %s4483_s17 = scalar_lea.vmem %s28_s26, 512  ;;  %p4488_p4 = scmp.lt.s32.totalorder %s28_s26, %s28_s26 }
   0x9   :  { %p4484_p3 = scmp.ne.s32.totalorder %s28_s26, %s4483_s17  ;;  %p4489_p5 = scmp.lt.s32.totalorder %s4483_s17, %s4483_s17 }
   0xb   :  { %p4490_p6 = por %p4489_p5, %p4488_p4 }
   0xd   :  { %p4491_p7 = pnand %p4490_p6, %p4484_p3 }
   0xf   :  { %4494 = shalt.err (!%p4491_p7)
}
  0x10   :  { %s4522_s18 = smov 128   ;;  %s4523_s19 = smov 8  }
  0x11   :  { %33 = dma.hbm_to_vmem [thread:$0]  %s5942_s1, 512, %s28_s26, [#allocation3], %s4522_s18, %s4522_s18, %s4523_s19  }
  0x12   :  { %4517 = dma.done.wait [#allocation3], 512  }
  0x13   :  { %4518 = vsyncadd [#allocation3], 4294966784  ;;  %vm69_vm0 = vcmask 523264   ;;  %v59_v0 = vld [vmem:[%s5941_s0] sm:$0xff]  ;;  %v61_v1 = vld [vmem:[%s5941_s0 + $0x10] sm:$0xff]  ;;  %vm500_vm1 = vcmask 130048  }
  0x14   :  { %v60_v2 = vld [vmem:[%s5941_s0 + $0x8] sm:$0xff]  ;;  %v70_v3 = vsel %vm69_vm0, %v59_v0, 0.0  ;;  %v76_v4 = vsel %vm69_vm0, %v61_v1, 0.0  ;;  %v62_v5 = vld [vmem:[%s5941_s0 + $0x18] sm:$0xff]  ;;  %v63_v8 = vld [vmem:[%s5941_s0 + $0x20] sm:$0xff]  ;;  %s4527_s25 = smov 80  }
  0x15   :  { %71 = vadd.xlane.f32.xlu0 %v70_v3  ;;  %77 = vadd.xlane.f32.xlu1 %v76_v4  ;;  %v73_v6 = vsel %vm69_vm0, %v60_v2, 0.0  ;;  %v79_v7 = vsel %vm69_vm0, %v62_v5, 0.0  ;;  %v64_v9 = vld [vmem:[%s5941_s0 + $0x28] sm:$0xff]  ;;  %v82_v10 = vsel %vm69_vm0, %v63_v8, 0.0  ;;  %v65_v12 = vld [vmem:[%s5941_s0 + $0x30] sm:$0xff]  ;;  %v66_v13 = vld [vmem:[%s5941_s0 + $0x38] sm:$0xff] }
  0x16   :  { %v85_v11 = vsel %vm69_vm0, %v64_v9, 0.0  ;;  %v88_v14 = vsel %vm69_vm0, %v65_v12, 0.0  ;;  %v91_v15 = vsel %vm69_vm0, %v66_v13, 0.0  ;;  %v204_v56 = vld [vmem:[%s5945_s4 + $0x8] sm:$0xff]  ;;  %v206_v57 = vld [vmem:[%s5945_s4 + $0x18] sm:$0xff]  ;;  %v203_v59 = vld [vmem:[%s5945_s4] sm:$0xff] }
  0x17   :  { %v3905_v58 = vpack.c.bf16 %v206_v57, %v204_v56  ;;  %v205_v60 = vld [vmem:[%s5945_s4 + $0x10] sm:$0xff]  ;;  %v208_v62 = vld [vmem:[%s5945_s4 + $0x28] sm:$0xff]  ;;  %v210_v63 = vld [vmem:[%s5945_s4 + $0x38] sm:$0xff]  ;;  %s4528_s27 = smov 64   ;;  %vm1433_vm3 = vcmask 261120   ;;  %s4529_s28 = smov 16  }
  0x18   :  { %v3907_v61 = vpack.c.bf16 %v205_v60, %v203_v59  ;;  %v212_v4 = vld [vmem:[%s5945_s4 + $0x48] sm:$0xff]  ;;  %vm4920_vm2 = vmpackc.low %vm500_vm1, %vm500_vm1  ;;  %s4530_s1 = smov 32   ;;  %vm2674_vm4 = vcmask 392192  }
  0x19   :  { %74 = vadd.xlane.f32.xlu0 %v73_v6  ;;  %80 = vadd.xlane.f32.xlu1 %v79_v7  ;;  %v211_v7 = vld [vmem:[%s5945_s4 + $0x40] sm:$0xff] }
  0x1a   :  { %3906 = vmatprep.subr.bf16.mxu0 %v3905_v58  ;;  %4145 = vmatprep.subr.bf16.mxu1 %v3905_v58 }
  0x1b   :  { %3908 = vmatpush1.bf16.msra.mxu0 %v3907_v61  ;;  %4149 = vmatpush1.bf16.msra.mxu1 %v3907_v61 }
  0x1d   :  { %83 = vadd.xlane.f32.xlu0 %v82_v10  ;;  %86 = vadd.xlane.f32.xlu1 %v85_v11  ;;  %v216_v10 = vld [vmem:[%s5945_s4 + $0x68] sm:$0xff]  ;;  %v218_v11 = vld [vmem:[%s5945_s4 + $0x78] sm:$0xff] }
  0x21   :  { %89 = vadd.xlane.f32.xlu0 %v88_v14  ;;  %92 = vadd.xlane.f32.xlu1 %v91_v15  ;;  %v217_v14 = vld [vmem:[%s5945_s4 + $0x70] sm:$0xff] }
  0xa2   :  { %v72_v16 = vpop.xlane.xlu0 %71  ;;  %v78_v17 = vpop.xlane.xlu1 %77 }
  0xa3   :  { %v95_v18 = vmul.f32 0.015625, %v72_v16  ;;  %v97_v19 = vmul.f32 0.015625, %v78_v17  ;;  %v4524_v16 = vmov 0.0  }
  0xa4   :  { %307 = vmatprep.mubr.f32.mxu0 %v4524_v16  ;;  %331 = vmatprep.mubr.f32.mxu1 %v4524_v16 }
  0xa5   :  { %v4650_v20 = vsub.f32 %v59_v0, %v95_v18  ;;  %v4652_v21 = vsub.f32 %v61_v1, %v97_v19  ;;  %v3909_v0 = vpack.c.bf16 %v210_v63, %v208_v62  ;;  %v207_v1 = vld [vmem:[%s5945_s4 + $0x20] sm:$0xff] }
  0xa6   :  { %v75_v22 = vpop.xlane.xlu0 %74  ;;  %v81_v23 = vpop.xlane.xlu1 %80 }
  0xa7   :  { %v96_v24 = vmul.f32 0.015625, %v75_v22  ;;  %v98_v25 = vmul.f32 0.015625, %v81_v23  ;;  %v111_v26 = vmul.f32 %v4650_v20, %v4650_v20  ;;  %v113_v27 = vmul.f32 %v4652_v21, %v4652_v21  ;;  %3910 = vmatprep.subr.bf16.mxu0 %v3909_v0  ;;  %4146 = vmatprep.subr.bf16.mxu1 %v3909_v0 }
  0xa9   :  { %v4658_v28 = vsub.f32 %v60_v2, %v96_v24  ;;  %v4660_v29 = vsub.f32 %v62_v5, %v98_v25  ;;  %v119_v30 = vsel %vm69_vm0, %v111_v26, 0.0  ;;  %v125_v33 = vsel %vm69_vm0, %v113_v27, 0.0  ;;  %v209_v2 = vld [vmem:[%s5945_s4 + $0x30] sm:$0xff]  ;;  %v214_v5 = vld [vmem:[%s5945_s4 + $0x58] sm:$0xff] }
  0xaa   :  { %120 = vadd.xlane.f32.xlu0 %v119_v30  ;;  %v84_v31 = vpop.xlane.xlu0 %83  ;;  %v87_v32 = vpop.xlane.xlu1 %86  ;;  %v3911_v3 = vpack.c.bf16 %v209_v2, %v207_v1  ;;  %v3913_v6 = vpack.c.bf16 %v214_v5, %v212_v4 }
  0xab   :  { %v99_v34 = vmul.f32 0.015625, %v84_v31  ;;  %v100_v35 = vmul.f32 0.015625, %v87_v32  ;;  %v112_v36 = vmul.f32 %v4658_v28, %v4658_v28  ;;  %v114_v37 = vmul.f32 %v4660_v29, %v4660_v29 }
  0xac   :  { %3912 = vmatpush1.bf16.msra.mxu0 %v3911_v3  ;;  %4150 = vmatpush1.bf16.msra.mxu1 %v3911_v3 }
  0xad   :  { %v4668_v38 = vsub.f32 %v63_v8, %v99_v34  ;;  %v4670_v39 = vsub.f32 %v64_v9, %v100_v35  ;;  %v122_v40 = vsel %vm69_vm0, %v112_v36, 0.0  ;;  %v128_v43 = vsel %vm69_vm0, %v114_v37, 0.0  ;;  %v213_v8 = vld [vmem:[%s5945_s4 + $0x50] sm:$0xff]  ;;  %3914 = vmatprep.subr.bf16.mxu0 %v3913_v6  ;;  %4147 = vmatprep.subr.bf16.mxu1 %v3913_v6 }
  0xae   :  { %126 = vadd.xlane.f32.xlu0 %v125_v33  ;;  %123 = vadd.xlane.f32.xlu1 %v122_v40  ;;  %v90_v41 = vpop.xlane.xlu0 %89  ;;  %v93_v42 = vpop.xlane.xlu1 %92  ;;  %v3915_v9 = vpack.c.bf16 %v213_v8, %v211_v7 }
  0xaf   :  { %v101_v44 = vmul.f32 0.015625, %v90_v41  ;;  %v102_v45 = vmul.f32 0.015625, %v93_v42  ;;  %v115_v46 = vmul.f32 %v4668_v38, %v4668_v38  ;;  %v116_v47 = vmul.f32 %v4670_v39, %v4670_v39 }
  0xb0   :  { %3916 = vmatpush1.bf16.msra.mxu0 %v3915_v9  ;;  %4151 = vmatpush1.bf16.msra.mxu1 %v3915_v9 }
  0xb1   :  { %v4678_v48 = vsub.f32 %v65_v12, %v101_v44  ;;  %v4680_v49 = vsub.f32 %v66_v13, %v102_v45  ;;  %v131_v50 = vsel %vm69_vm0, %v115_v46, 0.0  ;;  %v134_v51 = vsel %vm69_vm0, %v116_v47, 0.0  ;;  %v215_v13 = vld [vmem:[%s5945_s4 + $0x60] sm:$0xff] }
  0xb2   :  { %129 = vadd.xlane.f32.xlu1 %v128_v43  ;;  %132 = vadd.xlane.f32.xlu0 %v131_v50  ;;  %v3917_v12 = vpack.c.bf16 %v218_v11, %v216_v10  ;;  %v3919_v15 = vpack.c.bf16 %v217_v14, %v215_v13  ;;  %v3327_v45 = vld [vmem:[%s5943_s2] ss:$0 sm:$0xff]  ;;  %s4525_s2 = smov 112  }
  0xb3   :  { %v117_v52 = vmul.f32 %v4678_v48, %v4678_v48  ;;  %v118_v53 = vmul.f32 %v4680_v49, %v4680_v49 }
  0xb4   :  { %3918 = vmatprep.subr.bf16.mxu0 %v3917_v12  ;;  %4148 = vmatprep.subr.bf16.mxu1 %v3917_v12 }
  0xb5   :  { %v137_v54 = vsel %vm69_vm0, %v117_v52, 0.0  ;;  %v140_v55 = vsel %vm69_vm0, %v118_v53, 0.0  ;;  %3920 = vmatpush1.bf16.msra.mxu0 %v3919_v15  ;;  %4152 = vmatpush1.bf16.msra.mxu1 %v3919_v15 }
  0xb6   :  { %135 = vadd.xlane.f32.xlu1 %v134_v51  ;;  %138 = vadd.xlane.f32.xlu0 %v137_v54  ;;  %v3328_v51 = vld [vmem:[%s5944_s3] ss:$0 sm:$0xff]  ;;  %s4526_s3 = smov 96  }
  0xba   :  { %141 = vadd.xlane.f32.xlu1 %v140_v55 }
 0x137   :  { %v121_v17 = vpop.xlane.xlu0 %120 }
 0x138   :  { %v143_v18 = vmul.f32 0.015625, %v121_v17 }
 0x13a   :  { %v151_v19 = vadd.f32 1e-05, %v143_v18 }
 0x13b   :  { %v124_v22 = vpop.xlane.xlu1 %123  ;;  %v127_v23 = vpop.xlane.xlu0 %126 }
 0x13c   :  { %4305 = vrsqrt.f32 %v151_v19  ;;  %v144_v24 = vmul.f32 0.015625, %v124_v22  ;;  %v145_v25 = vmul.f32 0.015625, %v127_v23 }
 0x13e   :  { %v152_v26 = vadd.f32 1e-05, %v144_v24  ;;  %v153_v27 = vadd.f32 1e-05, %v145_v25 }
 0x13f   :  { %v130_v30 = vpop.xlane.xlu1 %129  ;;  %v133_v31 = vpop.xlane.xlu0 %132 }
 0x140   :  { %4307 = vrsqrt.f32 %v152_v26  ;;  %v146_v32 = vmul.f32 0.015625, %v130_v30  ;;  %v147_v33 = vmul.f32 0.015625, %v133_v31 }
 0x141   :  { %4309 = vrsqrt.f32 %v153_v27 }
 0x142   :  { %v154_v34 = vadd.f32 1e-05, %v146_v32  ;;  %v155_v35 = vadd.f32 1e-05, %v147_v33 }
 0x143   :  { %v136_v36 = vpop.xlane.xlu1 %135  ;;  %v139_v37 = vpop.xlane.xlu0 %138 }
 0x144   :  { %4311 = vrsqrt.f32 %v154_v34  ;;  %v148_v40 = vmul.f32 0.015625, %v136_v36  ;;  %v149_v41 = vmul.f32 0.015625, %v139_v37 }
 0x145   :  { %4313 = vrsqrt.f32 %v155_v35 }
 0x146   :  { %v4306_v42 = vpop.eup %4305  ;;  %v156_v43 = vadd.f32 1e-05, %v148_v40  ;;  %v157_v44 = vadd.f32 1e-05, %v149_v41 }
 0x147   :  { %v142_v46 = vpop.xlane.xlu1 %141  ;;  %v167_v47 = vmul.f32 %v4306_v42, %v4650_v20 }
 0x148   :  { %4315 = vrsqrt.f32 %v156_v43  ;;  %v150_v50 = vmul.f32 0.015625, %v142_v46 }
 0x149   :  { %4317 = vrsqrt.f32 %v157_v44  ;;  %v181_v52 = vmul.f32 %v3327_v45, %v167_v47 }
 0x14a   :  { %v4308_v53 = vpop.eup %4307  ;;  %v158_v54 = vadd.f32 1e-05, %v150_v50 }
 0x14b   :  { %v4310_v55 = vpop.eup %4309  ;;  %v195_v56 = vadd.f32 %v3328_v51, %v181_v52  ;;  %v168_v57 = vmul.f32 %v4308_v53, %v4658_v28 }
 0x14c   :  { %4319 = vrsqrt.f32 %v158_v54  ;;  %v169_v58 = vmul.f32 %v4310_v55, %v4652_v21 }
 0x14d   :  { %3329 = vmatmul.mubr.msk.f32.vlgmr.msra.gmra.mrb[0].mxu0 %vm69_vm0, %v195_v56  ;;  %v182_v20 = vmul.f32 %v3327_v45, %v168_v57 }
 0x14e   :  { %v4312_v59 = vpop.eup %4311  ;;  %313 = vmatprep.mubr.f32.mxu0 %v4524_v16  ;;  %v183_v62 = vmul.f32 %v3327_v45, %v169_v58 }
 0x14f   :  { %v4314_v60 = vpop.eup %4313  ;;  %v196_v61 = vadd.f32 %v3328_v51, %v182_v20  ;;  %v170_v63 = vmul.f32 %v4312_v59, %v4660_v29 }
 0x150   :  { %v171_v0 = vmul.f32 %v4314_v60, %v4668_v38  ;;  %v197_v2 = vadd.f32 %v3328_v51, %v183_v62 }
 0x151   :  { %3330 = vmatmul.mubr.msk.f32.gmra.mrb[2].mxu0 %vm69_vm0, %v196_v61  ;;  %v184_v3 = vmul.f32 %v3327_v45, %v170_v63 }
 0x152   :  { %v4316_v1 = vpop.eup %4315  ;;  %319 = vmatprep.mubr.f32.mxu0 %v4524_v16  ;;  %v185_v28 = vmul.f32 %v3327_v45, %v171_v0 }
 0x153   :  { %v4318_v21 = vpop.eup %4317  ;;  %v172_v4 = vmul.f32 %v4316_v1, %v4670_v39  ;;  %v198_v38 = vadd.f32 %v3328_v51, %v184_v3 }
 0x154   :  { %v199_v5 = vadd.f32 %v3328_v51, %v185_v28  ;;  %v173_v6 = vmul.f32 %v4318_v21, %v4678_v48 }
 0x155   :  { %3331 = vmatmul.mubr.msk.f32.gmra.mrb[4].mxu0 %vm69_vm0, %v197_v2  ;;  %v186_v7 = vmul.f32 %v3327_v45, %v172_v4 }
 0x156   :  { %v4320_v29 = vpop.eup %4319  ;;  %3333 = vmatmul.mubr.msk.f32.vlgmr.msra.gmra.mrb[0].mxu1 %vm69_vm0, %v199_v5  ;;  %325 = vmatprep.mubr.f32.mxu0 %v4524_v16  ;;  %v187_v9 = vmul.f32 %v3327_v45, %v173_v6 }
 0x157   :  { %337 = vmatprep.mubr.f32.mxu1 %v4524_v16  ;;  %v200_v8 = vadd.f32 %v3328_v51, %v186_v7  ;;  %v174_v10 = vmul.f32 %v4320_v29, %v4680_v49 }
 0x158   :  { %v201_v39 = vadd.f32 %v3328_v51, %v187_v9 }
 0x159   :  { %3332 = vmatmul.mubr.msk.f32.gmra.mrb[6].mxu0 %vm69_vm0, %v198_v38  ;;  %v188_v48 = vmul.f32 %v3327_v45, %v174_v10 }
 0x15a   :  { %3334 = vmatmul.mubr.msk.f32.gmra.mrb[2].mxu1 %vm69_vm0, %v200_v8 }
 0x15b   :  { %343 = vmatprep.mubr.f32.mxu1 %v4524_v16  ;;  %v202_v11 = vadd.f32 %v3328_v51, %v188_v48 }
 0x15e   :  { %3335 = vmatmul.mubr.msk.f32.gmra.mrb[4].mxu1 %vm69_vm0, %v201_v39 }
 0x15f   :  { %349 = vmatprep.mubr.f32.mxu1 %v4524_v16 }
 0x162   :  { %3336 = vmatmul.mubr.msk.f32.gmra.mrb[6].mxu1 %vm69_vm0, %v202_v11 }
 0x220   :  { %v309_v12 = vpop.f32.mrb[0].mxu0 }
 0x221   :  { %364 = vrot.lane.b32.xlu0 %v309_v12, %s4525_s2  ;;  %v311_v49 = vpop.f32.mrb[1].mxu0  ;;  %3661 = vmatprep.mubr.msk.f32.mxu1 %vm500_vm1, %v309_v12 }
 0x224   :  { %v4770_v13 = vpop.f32.mrb[2].mxu0 }
 0x225   :  { %366 = vrot.lane.b32.xlu1 %v4770_v13, %s4525_s2  ;;  %v317_v14 = vpop.f32.mrb[3].mxu0  ;;  %v4165_v15 = vpack.i.bf16 %v4770_v13, %v309_v12 }
 0x226   :  { %v4775_v17 = vpack.i.bf16 %v317_v14, %v311_v49  ;;  %v4777_v18 = vpack.c.bf16 %v317_v14, %v311_v49 }
 0x228   :  { %v4779_v19 = vpop.f32.mrb[4].mxu0 }
 0x229   :  { %v4781_v22 = vpop.f32.mrb[0].mxu1  ;;  %368 = vrot.lane.b32.xlu1 %v4779_v19, %s4525_s2  ;;  %v323_v23 = vpop.f32.mrb[5].mxu0 }
 0x22a   :  { %372 = vrot.lane.b32.xlu0 %v4781_v22, %s4525_s2  ;;  %v335_v24 = vpop.f32.mrb[1].mxu1 }
 0x22c   :  { %v4787_v25 = vpop.f32.mrb[6].mxu0 }
 0x22d   :  { %v4789_v26 = vpop.f32.mrb[2].mxu1  ;;  %370 = vrot.lane.b32.xlu1 %v4787_v25, %s4525_s2  ;;  %v329_v27 = vpop.f32.mrb[7].mxu0  ;;  %v4175_v30 = vpack.i.bf16 %v4787_v25, %v4779_v19 }
 0x22e   :  { %380 = vrot.lane.b32.xlu0 %v309_v12, %s4526_s3  ;;  %v341_v31 = vpop.f32.mrb[3].mxu1  ;;  %v4170_v32 = vpack.i.bf16 %v4789_v26, %v4781_v22  ;;  %v4798_v33 = vpack.i.bf16 %v329_v27, %v323_v23  ;;  %v4802_v35 = vpack.c.bf16 %v329_v27, %v323_v23 }
 0x22f   :  { %v4800_v34 = vpack.i.bf16 %v341_v31, %v335_v24  ;;  %v4804_v36 = vpack.c.bf16 %v341_v31, %v335_v24 }
 0x231   :  { %v4806_v37 = vpop.f32.mrb[4].mxu1  ;;  %374 = vrot.lane.b32.xlu1 %v4789_v26, %s4525_s2 }
 0x232   :  { %376 = vrot.lane.b32.xlu0 %v4806_v37, %s4525_s2  ;;  %v347_v40 = vpop.f32.mrb[5].mxu1 }
 0x235   :  { %v4812_v41 = vpop.f32.mrb[6].mxu1  ;;  %382 = vrot.lane.b32.xlu1 %v4770_v13, %s4526_s3 }
 0x236   :  { %384 = vrot.lane.b32.xlu0 %v4779_v19, %s4526_s3  ;;  %v353_v42 = vpop.f32.mrb[7].mxu1  ;;  %v4185_v43 = vpack.i.bf16 %v4812_v41, %v4806_v37 }
 0x237   :  { %v4820_v44 = vpack.i.bf16 %v353_v42, %v347_v40  ;;  %v4822_v45 = vpack.c.bf16 %v353_v42, %v347_v40 }
 0x239   :  { %378 = vrot.lane.b32.xlu1 %v4812_v41, %s4525_s2 }
 0x23a   :  { %388 = vrot.lane.b32.xlu0 %v4781_v22, %s4526_s3 }
 0x23d   :  { %386 = vrot.lane.b32.xlu1 %v4787_v25, %s4526_s3 }
 0x23e   :  { %396 = vrot.lane.b32.xlu0 %v309_v12, %s4527_s25 }
 0x241   :  { %390 = vrot.lane.b32.xlu1 %v4789_v26, %s4526_s3 }
 0x242   :  { %392 = vrot.lane.b32.xlu0 %v4806_v37, %s4526_s3 }
 0x245   :  { %398 = vrot.lane.b32.xlu1 %v4770_v13, %s4527_s25 }
 0x246   :  { %400 = vrot.lane.b32.xlu0 %v4779_v19, %s4527_s25 }
 0x249   :  { %394 = vrot.lane.b32.xlu1 %v4812_v41, %s4526_s3 }
 0x24a   :  { %4166 = vrot.lane.b32.xlu0 %v4165_v15, %s4528_s27 }
 0x24d   :  { %402 = vrot.lane.b32.xlu1 %v4787_v25, %s4527_s25 }
 0x24e   :  { %406 = vrot.lane.b32.xlu0 %v4789_v26, %s4527_s25 }
 0x251   :  { %404 = vrot.lane.b32.xlu1 %v4781_v22, %s4527_s25 }
 0x252   :  { %408 = vrot.lane.b32.xlu0 %v4806_v37, %s4527_s25 }
 0x255   :  { %4176 = vrot.lane.b32.xlu1 %v4175_v30, %s4528_s27 }
 0x256   :  { %4171 = vrot.lane.b32.xlu0 %v4170_v32, %s4528_s27 }
 0x259   :  { %410 = vrot.lane.b32.xlu1 %v4812_v41, %s4527_s25 }
 0x25a   :  { %4186 = vrot.lane.b32.xlu0 %v4185_v43, %s4528_s27 }
 0x293   :  { %v365_v46 = vpop.permute.xlu0 %364 }
 0x294   :  { %3689 = vmatprep.mubr.msk.f32.mxu0 %vm500_vm1, %v365_v46 }
 0x297   :  { %v4856_v47 = vpop.permute.xlu1 %366 }
 0x298   :  { %v4180_v50 = vpack.i.bf16 %v4856_v47, %v365_v46 }
 0x29a   :  { %4181 = vrot.lane.b32.xlu1 %v4180_v50, %s4528_s27 }
 0x29b   :  { %v4860_v51 = vpop.permute.xlu1 %368 }
 0x29c   :  { %v4862_v52 = vpop.permute.xlu0 %372 }
 0x29f   :  { %v4864_v53 = vpop.permute.xlu1 %370 }
 0x2a0   :  { %v4190_v54 = vpack.i.bf16 %v4864_v53, %v4860_v51  ;;  %v4868_v55 = vpop.permute.xlu0 %380 }
 0x2a2   :  { %4191 = vrot.lane.b32.xlu1 %v4190_v54, %s4528_s27 }
 0x2a3   :  { %v4871_v56 = vpop.permute.xlu1 %374 }
 0x2a4   :  { %v4195_v57 = vpack.i.bf16 %v4871_v56, %v4862_v52  ;;  %v4875_v58 = vpop.permute.xlu0 %376 }
 0x2a6   :  { %4196 = vrot.lane.b32.xlu0 %v4195_v57, %s4528_s27 }
 0x2a7   :  { %v4878_v20 = vpop.permute.xlu1 %382 }
 0x2a8   :  { %v4200_v59 = vpack.i.bf16 %v4878_v20, %v4868_v55  ;;  %v4882_v60 = vpop.permute.xlu0 %384 }
 0x2aa   :  { %4201 = vrot.lane.b32.xlu1 %v4200_v59, %s4528_s27 }
 0x2ab   :  { %v4885_v61 = vpop.permute.xlu1 %378 }
 0x2ac   :  { %v4205_v62 = vpack.i.bf16 %v4885_v61, %v4875_v58  ;;  %v4889_v63 = vpop.permute.xlu0 %388 }
 0x2ae   :  { %4206 = vrot.lane.b32.xlu0 %v4205_v62, %s4528_s27 }
 0x2af   :  { %v4892_v0 = vpop.permute.xlu1 %386 }
 0x2b0   :  { %v4210_v1 = vpack.i.bf16 %v4892_v0, %v4882_v60  ;;  %v4896_v28 = vpop.permute.xlu0 %396 }
 0x2b2   :  { %4211 = vrot.lane.b32.xlu1 %v4210_v1, %s4528_s27 }
 0x2b3   :  { %v4899_v21 = vpop.permute.xlu1 %390 }
 0x2b4   :  { %v4215_v2 = vpack.i.bf16 %v4899_v21, %v4889_v63  ;;  %v4903_v3 = vpop.permute.xlu0 %392 }
 0x2b6   :  { %4216 = vrot.lane.b32.xlu0 %v4215_v2, %s4528_s27 }
 0x2b7   :  { %v4906_v4 = vpop.permute.xlu1 %398 }
 0x2b8   :  { %v4220_v5 = vpack.i.bf16 %v4906_v4, %v4896_v28  ;;  %v4910_v6 = vpop.permute.xlu0 %400 }
 0x2ba   :  { %4221 = vrot.lane.b32.xlu1 %v4220_v5, %s4528_s27 }
 0x2bb   :  { %v4913_v7 = vpop.permute.xlu1 %394 }
 0x2bc   :  { %v4225_v29 = vpack.i.bf16 %v4913_v7, %v4903_v3  ;;  %v4167_v38 = vpop.permute.xlu0 %4166 }
 0x2bd   :  { %v4169_v8 = vunpack.i.h.bf16 %v4167_v38  ;;  %v4168_v9 = vunpack.i.l.bf16 %v4167_v38 }
 0x2be   :  { %4226 = vrot.lane.b32.xlu0 %v4225_v29, %s4528_s27 }
 0x2bf   :  { %v3921_v39 = vpack.c.bf16 %v4169_v8, %v4168_v9  ;;  %v4924_v48 = vpop.permute.xlu1 %402 }
 0x2c0   :  { %v4230_v11 = vpack.i.bf16 %v4924_v48, %v4910_v6  ;;  %v4928_v12 = vpop.permute.xlu0 %406 }
 0x2c1   :  { %3923 = vmatprep.subr.msk.bf16.mxu1 %vm4920_vm2, %v3921_v39 }
 0x2c2   :  { %3926 = vmatpush3.bf16.xpose.msk.msra.mxu1 %vm4920_vm2, %v3921_v39  ;;  %4231 = vrot.lane.b32.xlu1 %v4230_v11, %s4528_s27 }
 0x2c3   :  { %v4935_v49 = vpop.permute.xlu1 %404 }
 0x2c4   :  { %v4235_v14 = vpack.i.bf16 %v4928_v12, %v4935_v49  ;;  %v4939_v15 = vpop.permute.xlu0 %408 }
 0x2c6   :  { %4236 = vrot.lane.b32.xlu0 %v4235_v14, %s4528_s27 }
 0x2c7   :  { %v4177_v23 = vpop.permute.xlu1 %4176 }
 0x2c8   :  { %v4179_v24 = vunpack.i.h.bf16 %v4177_v23  ;;  %v4178_v27 = vunpack.i.l.bf16 %v4177_v23  ;;  %v4172_v30 = vpop.permute.xlu0 %4171 }
 0x2c9   :  { %v4174_v31 = vunpack.i.h.bf16 %v4172_v30  ;;  %v4173_v32 = vunpack.i.l.bf16 %v4172_v30 }
 0x2ca   :  { %v3927_v40 = vpack.c.bf16 %v4179_v24, %v4178_v27  ;;  %4246 = vrot.lane.b32.xlu0 %v4775_v17, %s4525_s2 }
 0x2cb   :  { %v4944_v42 = vpop.permute.xlu1 %410  ;;  %v3933_v46 = vpack.c.bf16 %v4174_v31, %v4173_v32 }
 0x2cc   :  { %v4240_v43 = vpack.i.bf16 %v4944_v42, %v4939_v15  ;;  %3929 = vmatprep.subr.msk.bf16.mxu1 %vm4920_vm2, %v3927_v40  ;;  %v4187_v50 = vpop.permute.xlu0 %4186 }
 0x2cd   :  { %3932 = vmatpush3.bf16.xpose.msk.msra.mxu1 %vm4920_vm2, %v3927_v40  ;;  %v4189_v54 = vunpack.i.h.bf16 %v4187_v50  ;;  %v4188_v57 = vunpack.i.l.bf16 %v4187_v50 }
 0x2ce   :  { %4256 = vrot.lane.b32.xlu0 %v4775_v17, %s4526_s3  ;;  %4241 = vrot.lane.b32.xlu1 %v4240_v43, %s4528_s27  ;;  %s4531_s27 = smov 48  }
 0x2cf   :  { %3935 = vmatprep.subr.msk.bf16.mxu1 %vm4920_vm2, %v3933_v46  ;;  %v3939_v59 = vpack.c.bf16 %v4189_v54, %v4188_v57 }
 0x2d2   :  { %4266 = vrot.lane.b32.xlu0 %v4800_v34, %s4525_s2  ;;  %4251 = vrot.lane.b32.xlu1 %v4798_v33, %s4525_s2 }
 0x2d4   :  { %3662 = vmatmul.mubr.msk.f32.vlgmr.msra.gmra.mrb[8].mxu1 %vm500_vm1, %v4770_v13 }
 0x2d5   :  { %3664 = vmatprep.mubr.msk.f32.mxu1 %vm500_vm1, %v4779_v19  ;;  %3938 = vmatpush3.bf16.xpose.msk.msra.mxu1 %vm4920_vm2, %v3933_v46 }
 0x2d6   :  { %4276 = vrot.lane.b32.xlu0 %v4820_v44, %s4525_s2  ;;  %4261 = vrot.lane.b32.xlu1 %v4798_v33, %s4526_s3 }
 0x2d7   :  { %3941 = vmatprep.subr.msk.bf16.mxu1 %vm4920_vm2, %v3939_v59 }
 0x2d8   :  { %3665 = vmatmul.mubr.msk.f32.gmra.mrb[10].mxu1 %vm500_vm1, %v4787_v25 }
 0x2d9   :  { %3675 = vmatprep.mubr.msk.f32.mxu1 %vm500_vm1, %v4781_v22 }
 0x2da   :  { %4271 = vrot.lane.b32.xlu1 %v4775_v17, %s4527_s25 }
 0x2dd   :  { %3944 = vmatpush3.bf16.xpose.msk.msra.mxu1 %vm4920_vm2, %v3939_v59 }
 0x2de   :  { %4281 = vrot.lane.b32.xlu1 %v4798_v33, %s4527_s25 }
 0x2e4   :  { %3676 = vmatmul.mubr.msk.f32.vlgmr.msra.gmra.mrb[12].mxu1 %vm500_vm1, %v4789_v26 }
 0x2e5   :  { %3678 = vmatprep.mubr.msk.f32.mxu1 %vm500_vm1, %v4806_v37 }
 0x2e8   :  { %3679 = vmatmul.mubr.msk.f32.gmra.mrb[14].mxu1 %vm500_vm1, %v4812_v41 }
 0x2e9   :  { %3703 = vmatprep.mubr.msk.f32.mxu1 %vm500_vm1, %v4862_v52 }
 0x30c   :  { %v4182_v13 = vpop.permute.xlu1 %4181 }
 0x30d   :  { %v4184_v17 = vunpack.i.h.bf16 %v4182_v13  ;;  %v4183_v19 = vunpack.i.l.bf16 %v4182_v13 }
 0x30f   :  { %v3945_v22 = vpack.c.bf16 %v4184_v17, %v4183_v19 }
 0x311   :  { %3947 = vmatprep.subr.msk.bf16.mxu0 %vm4920_vm2, %v3945_v22 }
 0x312   :  { %3950 = vmatpush3.bf16.xpose.msk.msra.mxu0 %vm4920_vm2, %v3945_v22 }
 0x314   :  { %v4192_v25 = vpop.permute.xlu1 %4191 }
 0x315   :  { %v4194_v26 = vunpack.i.h.bf16 %v4192_v25  ;;  %v4193_v33 = vunpack.i.l.bf16 %v4192_v25  ;;  %v5101_v25 = vld [vmem:[#allocation2] sm:$0xff] }
 0x317   :  { %v3951_v37 = vpack.c.bf16 %v4194_v26, %v4193_v33  ;;  %v5109_v33 = vld [vmem:[#allocation2 + $0x18] sm:$0xff] }
 0x318   :  { %v4197_v62 = vpop.permute.xlu0 %4196 }
 0x319   :  { %v4199_v1 = vunpack.i.h.bf16 %v4197_v62  ;;  %v4198_v41 = vunpack.i.l.bf16 %v4197_v62  ;;  %3953 = vmatprep.subr.msk.bf16.mxu0 %vm4920_vm2, %v3951_v37 }
 0x31a   :  { %3956 = vmatpush3.bf16.xpose.msk.msra.mxu0 %vm4920_vm2, %v3951_v37 }
 0x31b   :  { %v3957_v52 = vpack.c.bf16 %v4199_v1, %v4198_v41 }
 0x31c   :  { %v4202_v2 = vpop.permute.xlu1 %4201 }
 0x31d   :  { %v4204_v5 = vunpack.i.h.bf16 %v4202_v2  ;;  %v4203_v29 = vunpack.i.l.bf16 %v4202_v2  ;;  %3959 = vmatprep.subr.msk.bf16.mxu1 %vm4920_vm2, %v3957_v52  ;;  %v5118_v2 = vld [vmem:[#allocation2 + $0x10] sm:$0xff] }
 0x31e   :  { %3962 = vmatpush3.bf16.xpose.msk.msra.mxu1 %vm4920_vm2, %v3957_v52 }
 0x31f   :  { %v3969_v38 = vpack.c.bf16 %v4204_v5, %v4203_v29 }
 0x320   :  { %v4207_v8 = vpop.permute.xlu0 %4206 }
 0x321   :  { %v4209_v9 = vunpack.i.h.bf16 %v4207_v8  ;;  %v4208_v39 = vunpack.i.l.bf16 %v4207_v8  ;;  %3690 = vmatmul.mubr.msk.f32.vlgmr.msra.gmra.mrb[8].mxu0 %vm500_vm1, %v4856_v47  ;;  %3971 = vmatprep.subr.msk.bf16.mxu0 %vm4920_vm2, %v3969_v38 }
 0x322   :  { %3692 = vmatprep.mubr.msk.f32.mxu0 %vm500_vm1, %v4860_v51  ;;  %3974 = vmatpush3.bf16.xpose.msk.msra.mxu0 %vm4920_vm2, %v3969_v38 }
 0x323   :  { %v3963_v11 = vpack.c.bf16 %v4209_v9, %v4208_v39 }
 0x324   :  { %v4212_v14 = vpop.permute.xlu1 %4211 }
 0x325   :  { %v4214_v23 = vunpack.i.h.bf16 %v4212_v14  ;;  %v4213_v24 = vunpack.i.l.bf16 %v4212_v14  ;;  %3693 = vmatmul.mubr.msk.f32.gmra.mrb[10].mxu0 %vm500_vm1, %v4864_v53  ;;  %3965 = vmatprep.subr.msk.bf16.mxu1 %vm4920_vm2, %v3963_v11 }
 0x326   :  { %3968 = vmatpush3.bf16.xpose.msk.msra.mxu1 %vm4920_vm2, %v3963_v11  ;;  %3717 = vmatprep.mubr.msk.f32.mxu0 %vm500_vm1, %v4868_v55 }
 0x327   :  { %v3975_v47 = vpack.c.bf16 %v4214_v23, %v4213_v24 }
 0x328   :  { %v4217_v51 = vpop.permute.xlu0 %4216 }
 0x329   :  { %v4219_v27 = vunpack.i.h.bf16 %v4217_v51  ;;  %v4218_v30 = vunpack.i.l.bf16 %v4217_v51  ;;  %3977 = vmatprep.subr.msk.bf16.mxu0 %vm4920_vm2, %v3975_v47 }
 0x32a   :  { %3980 = vmatpush3.bf16.xpose.msk.msra.mxu0 %vm4920_vm2, %v3975_v47 }
 0x32b   :  { %v3981_v53 = vpack.c.bf16 %v4219_v27, %v4218_v30 }
 0x32c   :  { %v4222_v31 = vpop.permute.xlu1 %4221 }
 0x32d   :  { %v4224_v32 = vunpack.i.h.bf16 %v4222_v31  ;;  %v4223_v40 = vunpack.i.l.bf16 %v4222_v31  ;;  %3704 = vmatmul.mubr.msk.f32.vlgmr.msra.gmra.mrb[16].mxu1 %vm500_vm1, %v4871_v56  ;;  %3983 = vmatprep.subr.msk.bf16.mxu1 %vm4920_vm2, %v3981_v53 }
 0x32e   :  { %3706 = vmatprep.mubr.msk.f32.mxu1 %vm500_vm1, %v4875_v58  ;;  %3986 = vmatpush3.bf16.xpose.msk.msra.mxu1 %vm4920_vm2, %v3981_v53 }
 0x32f   :  { %v3993_v55 = vpack.c.bf16 %v4224_v32, %v4223_v40 }
 0x330   :  { %v4227_v43 = vpop.permute.xlu0 %4226 }
 0x331   :  { %v4229_v46 = vunpack.i.h.bf16 %v4227_v43  ;;  %v4228_v50 = vunpack.i.l.bf16 %v4227_v43  ;;  %3707 = vmatmul.mubr.msk.f32.gmra.mrb[18].mxu1 %vm500_vm1, %v4885_v61  ;;  %3718 = vmatmul.mubr.msk.f32.vlgmr.msra.gmra.mrb[12].mxu0 %vm500_vm1, %v4878_v20 }
 0x332   :  { %3995 = vmatprep.subr.msk.bf16.mxu0 %vm4920_vm2, %v3993_v55  ;;  %3720 = vmatprep.mubr.msk.f32.mxu0 %vm500_vm1, %v4882_v60 }
 0x333   :  { %v3987_v56 = vpack.c.bf16 %v4229_v46, %v4228_v50  ;;  %3731 = vmatprep.mubr.msk.f32.mxu1 %vm500_vm1, %v4889_v63  ;;  %3998 = vmatpush3.bf16.xpose.msk.msra.mxu0 %vm4920_vm2, %v3993_v55 }
 0x334   :  { %v4232_v58 = vpop.permute.xlu1 %4231 }
 0x335   :  { %v4234_v54 = vunpack.i.h.bf16 %v4232_v58  ;;  %v4233_v57 = vunpack.i.l.bf16 %v4232_v58  ;;  %3721 = vmatmul.mubr.msk.f32.gmra.mrb[14].mxu0 %vm500_vm1, %v4892_v0  ;;  %3989 = vmatprep.subr.msk.bf16.mxu1 %vm4920_vm2, %v3987_v56 }
 0x336   :  { %3992 = vmatpush3.bf16.xpose.msk.msra.mxu1 %vm4920_vm2, %v3987_v56  ;;  %3745 = vmatprep.mubr.msk.f32.mxu0 %vm500_vm1, %v4896_v28 }
 0x337   :  { %v3999_v20 = vpack.c.bf16 %v4234_v54, %v4233_v57 }
 0x338   :  { %v4237_v60 = vpop.permute.xlu0 %4236 }
 0x339   :  { %v4239_v61 = vunpack.i.h.bf16 %v4237_v60  ;;  %v4238_v63 = vunpack.i.l.bf16 %v4237_v60  ;;  %4001 = vmatprep.subr.msk.bf16.mxu0 %vm4920_vm2, %v3999_v20 }
 0x33b   :  { %v4005_v59 = vpack.c.bf16 %v4239_v61, %v4238_v63  ;;  %4004 = vmatpush3.bf16.xpose.msk.msra.mxu0 %vm4920_vm2, %v3999_v20 }
 0x33c   :  { %4018 = vmatprep.subr.bf16.mxu0 %v4777_v18  ;;  %v4247_v0 = vpop.permute.xlu0 %4246 }
 0x33d   :  { %3732 = vmatmul.mubr.msk.f32.vlgmr.msra.gmra.mrb[20].mxu1 %vm500_vm1, %v4899_v21  ;;  %4007 = vmatprep.subr.msk.bf16.mxu1 %vm4920_vm2, %v4005_v59  ;;  %v4249_v19 = vunpack.i.h.bf16 %v4247_v0  ;;  %v4248_v22 = vunpack.i.l.bf16 %v4247_v0 }
 0x33e   :  { %3734 = vmatprep.mubr.msk.f32.mxu1 %vm500_vm1, %v4903_v3  ;;  %4010 = vmatpush3.bf16.xpose.msk.msra.mxu1 %vm4920_vm2, %v4005_v59 }
 0x340   :  { %v4242_v28 = vpop.permute.xlu1 %4241  ;;  %v5073_v3 = vpop.permute.xlu0 %4256 }
 0x341   :  { %v4244_v13 = vunpack.i.h.bf16 %v4242_v28  ;;  %v4243_v17 = vunpack.i.l.bf16 %v4242_v28  ;;  %3735 = vmatmul.mubr.msk.f32.gmra.mrb[22].mxu1 %vm500_vm1, %v4913_v7 }
 0x342   :  { %3746 = vmatmul.mubr.msk.f32.vlgmr.msra.gmra.mrb[16].mxu0 %vm500_vm1, %v4906_v4  ;;  %3759 = vmatprep.mubr.msk.f32.mxu1 %vm500_vm1, %v4935_v49  ;;  %v5082_v4 = vpack.c.bf16 %v4249_v19, %v4248_v22 }
 0x343   :  { %v4011_v21 = vpack.c.bf16 %v4244_v13, %v4243_v17  ;;  %3748 = vmatprep.mubr.msk.f32.mxu0 %vm500_vm1, %v4910_v6  ;;  %4020 = vmatpush3.bf16.msra.mxu0 %v4777_v18 }
 0x344   :  { %4022 = vmatprep.subr.bf16.mxu0 %v4802_v35  ;;  %v4267_v18 = vpop.permute.xlu0 %4266 }
 0x345   :  { %4013 = vmatprep.subr.msk.bf16.mxu1 %vm4920_vm2, %v4011_v21  ;;  %v4269_v6 = vunpack.i.h.bf16 %v4267_v18  ;;  %v4268_v7 = vunpack.i.l.bf16 %v4267_v18 }
 0x346   :  { %3749 = vmatmul.mubr.msk.f32.gmra.mrb[18].mxu0 %vm500_vm1, %v4924_v48  ;;  %4016 = vmatpush3.bf16.xpose.msk.msra.mxu1 %vm4920_vm2, %v4011_v21  ;;  %v5099_v48 = vld [vmem:[#allocation2 + $0x8] sm:$0xff] }
 0x347   :  { %4024 = vmatpush3.bf16.msra.mxu0 %v4802_v35  ;;  %4026 = vmatprep.subr.bf16.mxu1 %v4804_v36  ;;  %v5095_v35 = vpack.c.bf16 %v4269_v6, %v4268_v7 }
 0x348   :  { %4034 = vmatprep.subr.bf16.mxu0 %v5082_v4 }
 0x34d   :  { %3760 = vmatmul.mubr.msk.f32.vlgmr.msra.gmra.mrb[24].mxu1 %vm500_vm1, %v4928_v12 }
 0x34e   :  { %3762 = vmatprep.mubr.msk.f32.mxu1 %vm500_vm1, %v4939_v15  ;;  %4028 = vmatpush3.bf16.msra.mxu1 %v4804_v36 }
 0x34f   :  { %4030 = vmatprep.subr.bf16.mxu1 %v4822_v45 }
 0x351   :  { %3763 = vmatmul.mubr.msk.f32.gmra.mrb[26].mxu1 %vm500_vm1, %v4944_v42 }
 0x352   :  { %4032 = vmatpush3.bf16.msra.mxu1 %v4822_v45 }
 0x353   :  { %4042 = vmatprep.subr.bf16.mxu1 %v5095_v35 }
 0x3a7   :  { %v3663_v10 = vpop.f32.mrb[8].mxu1 }
 0x3a8   :  { %v1366_v12 = vmul.f32 0.125, %v3663_v10  ;;  %v583_v49 = vpop.f32.mrb[9].mxu1 }
 0x3a9   :  { %v1365_v15 = vmul.f32 0.125, %v583_v49 }
 0x3aa   :  { %v5104_v36 = vadd.f32 %v5099_v48, %v1366_v12 }
 0x3ab   :  { %v3666_v26 = vpop.f32.mrb[10].mxu1  ;;  %v5107_v42 = vadd.f32 %v5101_v25, %v1365_v15 }
 0x3ac   :  { %v1368_v45 = vmul.f32 0.125, %v3666_v26  ;;  %v593_v37 = vpop.f32.mrb[11].mxu1  ;;  %v1437_v62 = vsel %vm1433_vm3, %v5104_v36, -inf }
 0x3ad   :  { %v1367_v1 = vmul.f32 0.125, %v593_v37  ;;  %1438 = vmax.xlane.f32.xlu1 %v1437_v62  ;;  %v1434_v41 = vsel %vm1433_vm3, %v5107_v42, -inf }
 0x3ae   :  { %1435 = vmax.xlane.f32.xlu0 %v1434_v41  ;;  %v5116_v52 = vadd.f32 %v5109_v33, %v1368_v45 }
 0x3af   :  { %v5123_v29 = vadd.f32 %v5118_v2, %v1367_v1 }
 0x3b0   :  { %v1443_v5 = vsel %vm1433_vm3, %v5116_v52, -inf }
 0x3b1   :  { %v1440_v38 = vsel %vm1433_vm3, %v5123_v29, -inf }
 0x3b2   :  { %1444 = vmax.xlane.f32.xlu0 %v1443_v5 }
 0x3b6   :  { %1441 = vmax.xlane.f32.xlu0 %v1440_v38 }
 0x3b7   :  { %v3677_v8 = vpop.f32.mrb[12].mxu1 }
 0x3b8   :  { %v1370_v9 = vmul.f32 0.125, %v3677_v8  ;;  %v692_v39 = vpop.f32.mrb[13].mxu1 }
 0x3b9   :  { %v1369_v11 = vmul.f32 0.125, %v692_v39 }
 0x3ba   :  { %v5128_v14 = vadd.f32 %v5099_v48, %v1370_v9 }
 0x3bb   :  { %v3680_v23 = vpop.f32.mrb[14].mxu1  ;;  %v5133_v27 = vadd.f32 %v5101_v25, %v1369_v11 }
 0x3bc   :  { %v1372_v24 = vmul.f32 0.125, %v3680_v23  ;;  %v702_v47 = vpop.f32.mrb[15].mxu1  ;;  %v1449_v51 = vsel %vm1433_vm3, %v5128_v14, -inf }
 0x3bd   :  { %1450 = vmax.xlane.f32.xlu0 %v1449_v51  ;;  %v1371_v30 = vmul.f32 0.125, %v702_v47  ;;  %v1446_v53 = vsel %vm1433_vm3, %v5133_v27, -inf }
 0x3be   :  { %v5138_v31 = vadd.f32 %v5109_v33, %v1372_v24 }
 0x3bf   :  { %v5143_v40 = vadd.f32 %v5118_v2, %v1371_v30 }
 0x3c0   :  { %v1455_v32 = vsel %vm1433_vm3, %v5138_v31, -inf }
 0x3c1   :  { %1447 = vmax.xlane.f32.xlu0 %v1446_v53  ;;  %v1452_v55 = vsel %vm1433_vm3, %v5143_v40, -inf }
 0x3c5   :  { %1456 = vmax.xlane.f32.xlu0 %v1455_v32 }
 0x3c9   :  { %1453 = vmax.xlane.f32.xlu0 %v1452_v55 }
 0x3f4   :  { %v3691_v43 = vpop.f32.mrb[8].mxu0 }
 0x3f5   :  { %v1374_v46 = vmul.f32 0.125, %v3691_v43  ;;  %v801_v50 = vpop.f32.mrb[9].mxu0 }
 0x3f6   :  { %v1373_v63 = vmul.f32 0.125, %v801_v50 }
 0x3f7   :  { %v5148_v56 = vadd.f32 %v5099_v48, %v1374_v46 }
 0x3f8   :  { %v3694_v58 = vpop.f32.mrb[10].mxu0  ;;  %v5161_v22 = vadd.f32 %v5101_v25, %v1373_v63 }
 0x3f9   :  { %v1376_v54 = vmul.f32 0.125, %v3694_v58  ;;  %v811_v57 = vpop.f32.mrb[11].mxu0  ;;  %v1461_v20 = vsel %vm1433_vm3, %v5148_v56, -inf }
 0x3fa   :  { %1462 = vmax.xlane.f32.xlu1 %v1461_v20  ;;  %v1375_v15 = vmul.f32 0.125, %v811_v57  ;;  %v1458_v45 = vsel %vm1433_vm3, %v5161_v22, -inf }
 0x3fb   :  { %v5153_v60 = vadd.f32 %v5109_v33, %v1376_v54 }
 0x3fc   :  { %v5179_v8 = vadd.f32 %v5118_v2, %v1375_v15 }
 0x3fd   :  { %v1467_v61 = vsel %vm1433_vm3, %v5153_v60, -inf }
 0x3fe   :  { %1468 = vmax.xlane.f32.xlu1 %v1467_v61  ;;  %v1464_v47 = vsel %vm1433_vm3, %v5179_v8, -inf }
 0x400   :  { %v3705_v59 = vpop.f32.mrb[16].mxu1 }
 0x401   :  { %v1378_v0 = vmul.f32 0.125, %v3705_v59  ;;  %v910_v28 = vpop.f32.mrb[17].mxu1 }
 0x402   :  { %v1377_v21 = vmul.f32 0.125, %v910_v28 }
 0x403   :  { %v5158_v13 = vadd.f32 %v5099_v48, %v1378_v0 }
 0x404   :  { %v3708_v17 = vpop.f32.mrb[18].mxu1  ;;  %v3719_v19 = vpop.f32.mrb[12].mxu0  ;;  %v5173_v41 = vadd.f32 %v5101_v25, %v1377_v21 }
 0x405   :  { %v1380_v18 = vmul.f32 0.125, %v3708_v17  ;;  %v1382_v6 = vmul.f32 0.125, %v3719_v19  ;;  %v920_v7 = vpop.f32.mrb[19].mxu1  ;;  %v1019_v10 = vpop.f32.mrb[13].mxu0  ;;  %v1473_v12 = vsel %vm1433_vm3, %v5158_v13, -inf }
 0x406   :  { %1474 = vmax.xlane.f32.xlu0 %v1473_v12  ;;  %v1381_v37 = vmul.f32 0.125, %v1019_v10  ;;  %v1379_v38 = vmul.f32 0.125, %v920_v7  ;;  %v1470_v39 = vsel %vm1433_vm3, %v5173_v41, -inf }
 0x407   :  { %v5166_v49 = vadd.f32 %v5109_v33, %v1380_v18  ;;  %v5176_v5 = vadd.f32 %v5099_v48, %v1382_v6 }
 0x408   :  { %v3722_v26 = vpop.f32.mrb[14].mxu0  ;;  %v5186_v23 = vadd.f32 %v5101_v25, %v1381_v37  ;;  %v5196_v55 = vadd.f32 %v5118_v2, %v1379_v38 }
 0x409   :  { %v1029_v62 = vpop.f32.mrb[15].mxu0  ;;  %v1479_v1 = vsel %vm1433_vm3, %v5166_v49, -inf  ;;  %v1384_v9 = vmul.f32 0.125, %v3722_v26  ;;  %v1485_v11 = vsel %vm1433_vm3, %v5176_v5, -inf }
 0x40a   :  { %1459 = vmax.xlane.f32.xlu0 %v1458_v45  ;;  %1480 = vmax.xlane.f32.xlu1 %v1479_v1  ;;  %v1482_v53 = vsel %vm1433_vm3, %v5186_v23, -inf  ;;  %v1383_v43 = vmul.f32 0.125, %v1029_v62  ;;  %v1476_v61 = vsel %vm1433_vm3, %v5196_v55, -inf }
 0x40b   :  { %v5193_v32 = vadd.f32 %v5109_v33, %v1384_v9 }
 0x40c   :  { %v5212_v17 = vadd.f32 %v5118_v2, %v1383_v43 }
 0x40d   :  { %v1491_v20 = vsel %vm1433_vm3, %v5193_v32, -inf }
 0x40e   :  { %1471 = vmax.xlane.f32.xlu0 %v1470_v39  ;;  %1486 = vmax.xlane.f32.xlu1 %v1485_v11  ;;  %v1488_v15 = vsel %vm1433_vm3, %v5212_v17, -inf }
 0x410   :  { %v3733_v24 = vpop.f32.mrb[20].mxu1 }
 0x411   :  { %v1386_v51 = vmul.f32 0.125, %v3733_v24  ;;  %v1128_v30 = vpop.f32.mrb[21].mxu1 }
 0x412   :  { %1465 = vmax.xlane.f32.xlu0 %v1464_v47  ;;  %1483 = vmax.xlane.f32.xlu1 %v1482_v53  ;;  %v1385_v46 = vmul.f32 0.125, %v1128_v30 }
 0x413   :  { %v5203_v63 = vadd.f32 %v5099_v48, %v1386_v51 }
 0x414   :  { %v3736_v50 = vpop.f32.mrb[22].mxu1  ;;  %v5209_v28 = vadd.f32 %v5101_v25, %v1385_v46 }
 0x415   :  { %v1388_v58 = vmul.f32 0.125, %v3736_v50  ;;  %v3747_v54 = vpop.f32.mrb[16].mxu0  ;;  %v1138_v57 = vpop.f32.mrb[23].mxu1  ;;  %v1497_v6 = vsel %vm1433_vm3, %v5203_v63, -inf }
 0x416   :  { %v1237_v59 = vpop.f32.mrb[17].mxu0  ;;  %1492 = vmax.xlane.f32.xlu1 %v1491_v20  ;;  %1477 = vmax.xlane.f32.xlu0 %v1476_v61  ;;  %v1390_v19 = vmul.f32 0.125, %v3747_v54  ;;  %v1387_v21 = vmul.f32 0.125, %v1138_v57  ;;  %v1494_v12 = vsel %vm1433_vm3, %v5209_v28, -inf }
 0x417   :  { %v5206_v0 = vadd.f32 %v5109_v33, %v1388_v58  ;;  %v1389_v62 = vmul.f32 0.125, %v1237_v59 }
 0x418   :  { %v5223_v26 = vadd.f32 %v5099_v48, %v1390_v19  ;;  %v5226_v45 = vadd.f32 %v5118_v2, %v1387_v21 }
 0x419   :  { %v3750_v18 = vpop.f32.mrb[18].mxu0  ;;  %v1503_v7 = vsel %vm1433_vm3, %v5206_v0, -inf  ;;  %v5241_v46 = vadd.f32 %v5101_v25, %v1389_v62 }
 0x41a   :  { %v1247_v10 = vpop.f32.mrb[19].mxu0  ;;  %1498 = vmax.xlane.f32.xlu0 %v1497_v6  ;;  %1504 = vmax.xlane.f32.xlu1 %v1503_v7  ;;  %v1509_v9 = vsel %vm1433_vm3, %v5223_v26, -inf  ;;  %v1500_v39 = vsel %vm1433_vm3, %v5226_v45, -inf  ;;  %v1392_v30 = vmul.f32 0.125, %v3750_v18  ;;  %v5267_v7 = vpop.permute.xlu0 %4276 }
 0x41b   :  { %v1506_v57 = vsel %vm1433_vm3, %v5241_v46, -inf  ;;  %v1391_v61 = vmul.f32 0.125, %v1247_v10 }
 0x41c   :  { %v5251_v20 = vadd.f32 %v5109_v33, %v1392_v30 }
 0x41d   :  { %v5263_v18 = vadd.f32 %v5118_v2, %v1391_v61 }
 0x41e   :  { %1495 = vmax.xlane.f32.xlu0 %v1494_v12  ;;  %1489 = vmax.xlane.f32.xlu1 %v1488_v15  ;;  %v1515_v59 = vsel %vm1433_vm3, %v5251_v20, -inf  ;;  %v5269_v12 = vpop.permute.xlu1 %4251 }
 0x41f   :  { %v1512_v6 = vsel %vm1433_vm3, %v5263_v18, -inf }
 0x420   :  { %v3761_v37 = vpop.f32.mrb[24].mxu1 }
 0x421   :  { %v1394_v1 = vmul.f32 0.125, %v3761_v37  ;;  %v1346_v38 = vpop.f32.mrb[25].mxu1 }
 0x422   :  { %v1393_v11 = vmul.f32 0.125, %v1346_v38  ;;  %1510 = vmax.xlane.f32.xlu1 %v1509_v9  ;;  %1501 = vmax.xlane.f32.xlu0 %v1500_v39 }
 0x423   :  { %v5233_v24 = vadd.f32 %v5099_v48, %v1394_v1 }
 0x424   :  { %v3764_v47 = vpop.f32.mrb[26].mxu1  ;;  %v5236_v51 = vadd.f32 %v5101_v25, %v1393_v11 }
 0x425   :  { %v1356_v53 = vpop.f32.mrb[27].mxu1  ;;  %v1521_v43 = vsel %vm1433_vm3, %v5233_v24, -inf  ;;  %v1396_v54 = vmul.f32 0.125, %v3764_v47 }
 0x426   :  { %v1395_v50 = vmul.f32 0.125, %v1356_v53  ;;  %1522 = vmax.xlane.f32.xlu1 %v1521_v43  ;;  %v1518_v58 = vsel %vm1433_vm3, %v5236_v51, -inf }
 0x427   :  { %1519 = vmax.xlane.f32.xlu0 %v1518_v58  ;;  %v5258_v19 = vadd.f32 %v5109_v33, %v1396_v54  ;;  %v5273_v33 = vpop.permute.xlu1 %4261 }
 0x428   :  { %v5246_v48 = vadd.f32 %v5118_v2, %v1395_v50 }
 0x429   :  { %v1527_v21 = vsel %vm1433_vm3, %v5258_v19, -inf }
 0x42a   :  { %1507 = vmax.xlane.f32.xlu1 %v1506_v57  ;;  %v1524_v25 = vsel %vm1433_vm3, %v5246_v48, -inf }
 0x42b   :  { %1525 = vmax.xlane.f32.xlu0 %v1524_v25  ;;  %v5277_v2 = vpop.permute.xlu1 %4271 }
 0x42e   :  { %1516 = vmax.xlane.f32.xlu1 %v1515_v59 }
 0x42f   :  { %v5280_v38 = vpop.permute.xlu1 %4281 }
 0x432   :  { %1528 = vmax.xlane.f32.xlu1 %v1527_v21 }
 0x436   :  { %1513 = vmax.xlane.f32.xlu1 %v1512_v6 }
 0x43a   :  { %v1439_v47 = vpop.xlane.xlu1 %1438 }
 0x43b   :  { %v1436_v10 = vpop.xlane.xlu0 %1435  ;;  %v1531_v43 = vsub.f32 %v5104_v36, %v1439_v47 }
 0x43c   :  { %v1530_v62 = vsub.f32 %v5107_v42, %v1436_v10 }
 0x43d   :  { %v1564_v42 = vmul.f32 1.442695, %v1531_v43 }
 0x43e   :  { %v1562_v9 = vmul.f32 1.442695, %v1530_v62 }
 0x43f   :  { %v1445_v15 = vpop.xlane.xlu0 %1444 }
 0x440   :  { %4321 = vpow2.f32 %v1562_v9  ;;  %v1533_v57 = vsub.f32 %v5116_v52, %v1445_v15 }
 0x441   :  { %4286 = vrot.lane.b32.xlu0 %v4800_v34, %s4526_s3 }
 0x442   :  { %v1568_v21 = vmul.f32 1.442695, %v1533_v57 }
 0x443   :  { %v1442_v37 = vpop.xlane.xlu0 %1441 }
 0x444   :  { %v1532_v39 = vsub.f32 %v5123_v29, %v1442_v37 }
 0x446   :  { %v1566_v30 = vmul.f32 1.442695, %v1532_v39 }
 0x447   :  { %4291 = vrot.lane.b32.xlu1 %v4820_v44, %s4526_s3 }
 0x448   :  { %4323 = vpow2.f32 %v1566_v30 }
 0x44a   :  { %v1451_v1 = vpop.xlane.xlu0 %1450  ;;  %v5288_v59 = vpop.eup %4321 }
 0x44b   :  { %v1535_v53 = vsub.f32 %v5128_v14, %v1451_v1  ;;  %v1626_v6 = vsel %vm1433_vm3, %v5288_v59, 0.0 }
 0x44d   :  { %v1572_v58 = vmul.f32 1.442695, %v1535_v53 }
 0x44e   :  { %v1448_v11 = vpop.xlane.xlu0 %1447 }
 0x44f   :  { %v1534_v54 = vsub.f32 %v5133_v27, %v1448_v11  ;;  %4325 = vpow2.f32 %v1572_v58 }
 0x450   :  { %4327 = vpow2.f32 %v1564_v42 }
 0x451   :  { %v1570_v25 = vmul.f32 1.442695, %v1534_v54 }
 0x452   :  { %v1457_v50 = vpop.xlane.xlu0 %1456  ;;  %v5293_v27 = vpop.eup %4323 }
 0x453   :  { %v1537_v29 = vsub.f32 %v5138_v31, %v1457_v50  ;;  %4329 = vpow2.f32 %v1570_v25  ;;  %v1632_v31 = vsel %vm1433_vm3, %v5293_v27, 0.0 }
 0x454   :  { %4331 = vpow2.f32 %v1568_v21 }
 0x455   :  { %v1576_v14 = vmul.f32 1.442695, %v1537_v29 }
 0x456   :  { %v1454_v61 = vpop.xlane.xlu0 %1453 }
 0x457   :  { %v1536_v36 = vsub.f32 %v5143_v40, %v1454_v61  ;;  %4333 = vpow2.f32 %v1576_v14 }
 0x459   :  { %v1574_v52 = vmul.f32 1.442695, %v1536_v36  ;;  %v5297_v10 = vpop.eup %4325 }
 0x45a   :  { %v5299_v15 = vpop.eup %4327  ;;  %v1641_v40 = vsel %vm1433_vm3, %v5297_v10, 0.0 }
 0x45b   :  { %4335 = vpow2.f32 %v1574_v52  ;;  %v1629_v62 = vsel %vm1433_vm3, %v5299_v15, 0.0 }
 0x45d   :  { %v5303_v37 = vpop.eup %4329 }
 0x45e   :  { %v5307_v1 = vpop.eup %4331  ;;  %v1638_v9 = vsel %vm1433_vm3, %v5303_v37, 0.0 }
 0x45f   :  { %v1635_v11 = vsel %vm1433_vm3, %v5307_v1, 0.0 }
 0x460   :  { %1627 = vadd.xlane.f32.xlu0 %v1626_v6 }
 0x461   :  { %v5311_v39 = vpop.eup %4333 }
 0x462   :  { %v1647_v47 = vsel %vm1433_vm3, %v5311_v39, 0.0 }
 0x464   :  { %1633 = vadd.xlane.f32.xlu0 %v1632_v31 }
 0x465   :  { %v5317_v30 = vpop.eup %4335 }
 0x466   :  { %v1644_v53 = vsel %vm1433_vm3, %v5317_v30, 0.0 }
 0x468   :  { %1642 = vadd.xlane.f32.xlu0 %v1641_v40 }
 0x46b   :  { %1630 = vadd.xlane.f32.xlu1 %v1629_v62 }
 0x46c   :  { %1639 = vadd.xlane.f32.xlu0 %v1638_v9 }
 0x46f   :  { %1636 = vadd.xlane.f32.xlu1 %v1635_v11 }
 0x470   :  { %1648 = vadd.xlane.f32.xlu0 %v1647_v47 }
 0x474   :  { %1645 = vadd.xlane.f32.xlu0 %v1644_v53 }
 0x487   :  { %v1463_v43 = vpop.xlane.xlu1 %1462 }
 0x488   :  { %v1539_v50 = vsub.f32 %v5148_v56, %v1463_v43 }
 0x48a   :  { %v1580_v58 = vmul.f32 1.442695, %v1539_v50 }
 0x48b   :  { %v1469_v54 = vpop.xlane.xlu1 %1468 }
 0x48c   :  { %4337 = vpow2.f32 %v1580_v58  ;;  %v1541_v42 = vsub.f32 %v5153_v60, %v1469_v54 }
 0x48e   :  { %v1584_v57 = vmul.f32 1.442695, %v1541_v42 }
 0x490   :  { %4339 = vpow2.f32 %v1584_v57 }
 0x493   :  { %v1475_v25 = vpop.xlane.xlu0 %1474 }
 0x494   :  { %v1543_v29 = vsub.f32 %v5158_v13, %v1475_v25 }
 0x496   :  { %v5324_v61 = vpop.eup %4337  ;;  %v1588_v21 = vmul.f32 1.442695, %v1543_v29 }
 0x497   :  { %v1460_v14 = vpop.xlane.xlu0 %1459  ;;  %v1481_v36 = vpop.xlane.xlu1 %1480  ;;  %v1653_v6 = vsel %vm1433_vm3, %v5324_v61, 0.0 }
 0x498   :  { %4341 = vpow2.f32 %v1588_v21  ;;  %v1538_v56 = vsub.f32 %v5161_v22, %v1460_v14  ;;  %v1545_v52 = vsub.f32 %v5166_v49, %v1481_v36  ;;  %1654 = vadd.xlane.f32.xlu1 %v1653_v6 }
 0x49a   :  { %v5330_v60 = vpop.eup %4339  ;;  %v1578_v31 = vmul.f32 1.442695, %v1538_v56  ;;  %v1592_v40 = vmul.f32 1.442695, %v1545_v52 }
 0x49b   :  { %v1472_v62 = vpop.xlane.xlu0 %1471  ;;  %v1487_v13 = vpop.xlane.xlu1 %1486  ;;  %v1659_v9 = vsel %vm1433_vm3, %v5330_v60, 0.0 }
 0x49c   :  { %4343 = vpow2.f32 %v1578_v31  ;;  %v1542_v11 = vsub.f32 %v5173_v41, %v1472_v62  ;;  %1660 = vadd.xlane.f32.xlu1 %v1659_v9  ;;  %v1547_v58 = vsub.f32 %v5176_v5, %v1487_v13 }
 0x49d   :  { %4345 = vpow2.f32 %v1592_v40 }
 0x49e   :  { %v1586_v47 = vmul.f32 1.442695, %v1542_v11 }
 0x49f   :  { %v1466_v53 = vpop.xlane.xlu0 %1465  ;;  %v1484_v22 = vpop.xlane.xlu1 %1483 }
 0x4a0   :  { %4347 = vpow2.f32 %v1586_v47  ;;  %v1540_v49 = vsub.f32 %v5179_v8, %v1466_v53  ;;  %v1596_v8 = vmul.f32 1.442695, %v1547_v58  ;;  %v1546_v14 = vsub.f32 %v5186_v23, %v1484_v22 }
 0x4a2   :  { %v5336_v43 = vpop.eup %4341  ;;  %v1582_v50 = vmul.f32 1.442695, %v1540_v49  ;;  %v1594_v40 = vmul.f32 1.442695, %v1546_v14 }
 0x4a3   :  { %v1493_v54 = vpop.xlane.xlu1 %1492  ;;  %v1478_v42 = vpop.xlane.xlu0 %1477  ;;  %v1665_v57 = vsel %vm1433_vm3, %v5336_v43, 0.0 }
 0x4a4   :  { %4349 = vpow2.f32 %v1582_v50  ;;  %v1544_v41 = vsub.f32 %v5196_v55, %v1478_v42  ;;  %1666 = vadd.xlane.f32.xlu0 %v1665_v57  ;;  %v1549_v23 = vsub.f32 %v5193_v32, %v1493_v54 }
 0x4a6   :  { %v5342_v25 = vpop.eup %4343  ;;  %v1590_v29 = vmul.f32 1.442695, %v1544_v41  ;;  %v1600_v22 = vmul.f32 1.442695, %v1549_v23 }
 0x4a7   :  { %v5344_v21 = vpop.eup %4345  ;;  %v1499_v36 = vpop.xlane.xlu0 %1498  ;;  %v1650_v5 = vsel %vm1433_vm3, %v5342_v25, 0.0 }
 0x4a8   :  { %v1505_v6 = vpop.xlane.xlu1 %1504  ;;  %v1551_v56 = vsub.f32 %v5203_v63, %v1499_v36  ;;  %v1671_v52 = vsel %vm1433_vm3, %v5344_v21, 0.0  ;;  %1651 = vadd.xlane.f32.xlu0 %v1650_v5  ;;  %4351 = vpow2.f32 %v1590_v29 }
 0x4a9   :  { %1672 = vadd.xlane.f32.xlu1 %v1671_v52  ;;  %4353 = vpow2.f32 %v1596_v8  ;;  %v1553_v47 = vsub.f32 %v5206_v0, %v1505_v6 }
 0x4aa   :  { %v5352_v55 = vpop.eup %4347  ;;  %v1604_v31 = vmul.f32 1.442695, %v1551_v56 }
 0x4ab   :  { %v1496_v62 = vpop.xlane.xlu0 %1495  ;;  %v1662_v9 = vsel %vm1433_vm3, %v5352_v55, 0.0  ;;  %v1608_v58 = vmul.f32 1.442695, %v1553_v47 }
 0x4ac   :  { %v1490_v13 = vpop.xlane.xlu1 %1489  ;;  %4355 = vpow2.f32 %v1604_v31  ;;  %v1550_v63 = vsub.f32 %v5209_v28, %v1496_v62  ;;  %1663 = vadd.xlane.f32.xlu0 %v1662_v9 }
 0x4ad   :  { %4357 = vpow2.f32 %v1594_v40  ;;  %v1548_v28 = vsub.f32 %v5212_v17, %v1490_v13 }
 0x4ae   :  { %v5358_v11 = vpop.eup %4349  ;;  %v1602_v53 = vmul.f32 1.442695, %v1550_v63 }
 0x4af   :  { %v1502_v50 = vpop.xlane.xlu0 %1501  ;;  %v1656_v32 = vsel %vm1433_vm3, %v5358_v11, 0.0  ;;  %v1598_v14 = vmul.f32 1.442695, %v1548_v28 }
 0x4b0   :  { %v1511_v49 = vpop.xlane.xlu1 %1510  ;;  %4359 = vpow2.f32 %v1602_v53  ;;  %1657 = vadd.xlane.f32.xlu0 %v1656_v32  ;;  %v1552_v36 = vsub.f32 %v5226_v45, %v1502_v50 }
 0x4b1   :  { %4361 = vpow2.f32 %v1600_v22  ;;  %v1555_v45 = vsub.f32 %v5223_v26, %v1511_v49 }
 0x4b2   :  { %v5363_v54 = vpop.eup %4351  ;;  %4363 = vpow2.f32 %v1608_v58  ;;  %v1606_v23 = vmul.f32 1.442695, %v1552_v36 }
 0x4b3   :  { %v1668_v0 = vsel %vm1433_vm3, %v5363_v54, 0.0  ;;  %v5368_v41 = vpop.eup %4353 }
 0x4b4   :  { %v1523_v42 = vpop.xlane.xlu1 %1522  ;;  %v1520_v57 = vpop.xlane.xlu0 %1519  ;;  %1669 = vadd.xlane.f32.xlu1 %v1668_v0  ;;  %v1677_v56 = vsel %vm1433_vm3, %v5368_v41, 0.0 }
 0x4b5   :  { %v1558_v29 = vsub.f32 %v5236_v51, %v1520_v57  ;;  %v1559_v26 = vsub.f32 %v5233_v24, %v1523_v42 }
 0x4b6   :  { %v5371_v8 = vpop.eup %4355 }
 0x4b7   :  { %v1618_v6 = vmul.f32 1.442695, %v1558_v29  ;;  %v1689_v17 = vsel %vm1433_vm3, %v5371_v8, 0.0  ;;  %v5378_v31 = vpop.eup %4357  ;;  %v1620_v58 = vmul.f32 1.442695, %v1559_v26 }
 0x4b8   :  { %v1508_v5 = vpop.xlane.xlu1 %1507  ;;  %1690 = vadd.xlane.f32.xlu0 %v1689_v17  ;;  %v1526_v52 = vpop.xlane.xlu0 %1525  ;;  %1678 = vadd.xlane.f32.xlu1 %v1677_v56  ;;  %v1674_v63 = vsel %vm1433_vm3, %v5378_v31, 0.0 }
 0x4b9   :  { %4365 = vpow2.f32 %v1618_v6  ;;  %v1560_v40 = vsub.f32 %v5246_v48, %v1526_v52  ;;  %v1612_v48 = vmul.f32 1.442695, %v1555_v45  ;;  %v1554_v28 = vsub.f32 %v5241_v46, %v1508_v5 }
 0x4ba   :  { %v5380_v51 = vpop.eup %4359  ;;  %4367 = vpow2.f32 %v1598_v14 }
 0x4bb   :  { %v1686_v13 = vsel %vm1433_vm3, %v5380_v51, 0.0  ;;  %v5389_v47 = vpop.eup %4361  ;;  %v1622_v53 = vmul.f32 1.442695, %v1560_v40  ;;  %4369 = vpow2.f32 %v1606_v23  ;;  %v1610_v0 = vmul.f32 1.442695, %v1554_v28 }
 0x4bc   :  { %v1517_v62 = vpop.xlane.xlu1 %1516  ;;  %1687 = vadd.xlane.f32.xlu0 %v1686_v13  ;;  %1675 = vadd.xlane.f32.xlu1 %v1674_v63  ;;  %v5392_v49 = vpop.eup %4363  ;;  %v1683_v50 = vsel %vm1433_vm3, %v5389_v47, 0.0 }
 0x4bd   :  { %v1557_v9 = vsub.f32 %v5251_v20, %v1517_v62  ;;  %v1695_v57 = vsel %vm1433_vm3, %v5392_v49, 0.0 }
 0x4bf   :  { %v1616_v22 = vmul.f32 1.442695, %v1557_v9 }
 0x4c0   :  { %1684 = vadd.xlane.f32.xlu1 %v1683_v50  ;;  %v1529_v20 = vpop.xlane.xlu1 %1528  ;;  %v4287_v50 = vpop.permute.xlu0 %4286 }
 0x4c1   :  { %4371 = vpow2.f32 %v1616_v22  ;;  %v1561_v29 = vsub.f32 %v5258_v19, %v1529_v20 }
 0x4c2   :  { %4373 = vpow2.f32 %v1622_v53 }
 0x4c3   :  { %v5396_v32 = vpop.eup %4365  ;;  %4375 = vpow2.f32 %v1612_v48  ;;  %v1624_v5 = vmul.f32 1.442695, %v1561_v29 }
 0x4c4   :  { %v1710_v24 = vsel %vm1433_vm3, %v5396_v32, 0.0  ;;  %v5403_v42 = vpop.eup %4367  ;;  %1696 = vadd.xlane.f32.xlu1 %v1695_v57  ;;  %4377 = vpow2.f32 %v1620_v58  ;;  %v1514_v14 = vpop.xlane.xlu1 %1513 }
 0x4c5   :  { %1711 = vadd.xlane.f32.xlu0 %v1710_v24  ;;  %v1680_v36 = vsel %vm1433_vm3, %v5403_v42, 0.0  ;;  %v5408_v6 = vpop.eup %4369  ;;  %4379 = vpow2.f32 %v1610_v0  ;;  %v1556_v17 = vsub.f32 %v5263_v18, %v1514_v14 }
 0x4c6   :  { %v1692_v19 = vsel %vm1433_vm3, %v5408_v6, 0.0  ;;  %4381 = vpow2.f32 %v1624_v5 }
 0x4c7   :  { %v1614_v45 = vmul.f32 1.442695, %v1556_v17 }
 0x4c8   :  { %1681 = vadd.xlane.f32.xlu1 %v1680_v36  ;;  %v5445_v28 = vpop.permute.xlu1 %4291 }
 0x4c9   :  { %4383 = vpow2.f32 %v1614_v45 }
 0x4cb   :  { %v5410_v46 = vpop.eup %4371 }
 0x4cc   :  { %v1707_v56 = vsel %vm1433_vm3, %v5410_v46, 0.0  ;;  %v5415_v52 = vpop.eup %4373  ;;  %1693 = vadd.xlane.f32.xlu1 %v1692_v19  ;;  %v4253_v19 = vunpack.i.l.bf16 %v5269_v12 }
 0x4cd   :  { %1708 = vadd.xlane.f32.xlu0 %v1707_v56  ;;  %v5419_v40 = vpop.eup %4375  ;;  %v1716_v23 = vsel %vm1433_vm3, %v5415_v52, 0.0  ;;  %v4254_v56 = vunpack.i.h.bf16 %v5269_v12 }
 0x4ce   :  { %v1701_v18 = vsel %vm1433_vm3, %v5419_v40, 0.0  ;;  %v5425_v62 = vpop.eup %4377 }
 0x4cf   :  { %v1713_v13 = vsel %vm1433_vm3, %v5425_v62, 0.0  ;;  %v5429_v9 = vpop.eup %4379  ;;  %v4037_v12 = vpack.c.bf16 %v4254_v56, %v4253_v19 }
 0x4d0   :  { %1702 = vadd.xlane.f32.xlu1 %v1701_v18  ;;  %v1698_v63 = vsel %vm1433_vm3, %v5429_v9, 0.0  ;;  %v5433_v53 = vpop.eup %4381 }
 0x4d1   :  { %1717 = vadd.xlane.f32.xlu0 %v1716_v23  ;;  %v1719_v22 = vsel %vm1433_vm3, %v5433_v53, 0.0 }
 0x4d3   :  { %v5437_v48 = vpop.eup %4383 }
 0x4d4   :  { %1714 = vadd.xlane.f32.xlu1 %v1713_v13  ;;  %v1704_v26 = vsel %vm1433_vm3, %v5437_v48, 0.0  ;;  %v4278_v13 = vunpack.i.l.bf16 %v5267_v7 }
 0x4d8   :  { %1699 = vadd.xlane.f32.xlu1 %v1698_v63 }
 0x4dc   :  { %1720 = vadd.xlane.f32.xlu1 %v1719_v22 }
 0x4e0   :  { %1705 = vadd.xlane.f32.xlu1 %v1704_v26  ;;  %v4259_v26 = vunpack.i.h.bf16 %v5073_v3 }
 0x4e7   :  { %4296 = vrot.lane.b32.xlu0 %v4800_v34, %s4527_s25 }
 0x4ed   :  { %v1628_v20 = vpop.xlane.xlu0 %1627 }
 0x4ee   :  { %4385 = vrcp.f32 %v1628_v20  ;;  %v4258_v20 = vunpack.i.l.bf16 %v5073_v3 }
 0x4f1   :  { %v1634_v58 = vpop.xlane.xlu0 %1633  ;;  %4301 = vrot.lane.b32.xlu1 %v4820_v44, %s4527_s25 }
 0x4f2   :  { %4387 = vrcp.f32 %v1634_v58 }
 0x4f5   :  { %v1643_v57 = vpop.xlane.xlu0 %1642 }
 0x4f6   :  { %4389 = vrcp.f32 %v1643_v57 }
 0x4f8   :  { %v4386_v24 = vpop.eup %4385  ;;  %v1631_v0 = vpop.xlane.xlu1 %1630 }
 0x4f9   :  { %4391 = vrcp.f32 %v1631_v0  ;;  %v1640_v29 = vpop.xlane.xlu0 %1639  ;;  %v1754_v14 = vmul.f32 %v4386_v24, %v5288_v59  ;;  %v4279_v59 = vunpack.i.h.bf16 %v5267_v7 }
 0x4fa   :  { %4393 = vrcp.f32 %v1640_v29 }
 0x4fb   :  { %3773 = vmatprep.mubr.msk.f32.mxu0 %vm1433_vm3, %v1754_v14  ;;  %v4045_v3 = vpack.c.bf16 %v4279_v59, %v4278_v13  ;;  %v4274_v13 = vunpack.i.h.bf16 %v5277_v2 }
 0x4fc   :  { %v1637_v34 = vpop.xlane.xlu1 %1636  ;;  %v4388_v5 = vpop.eup %4387 }
 0x4fd   :  { %4395 = vrcp.f32 %v1637_v34  ;;  %v1649_v36 = vpop.xlane.xlu0 %1648  ;;  %v1756_v63 = vmul.f32 %v4388_v5, %v5293_v27  ;;  %v4289_v27 = vunpack.i.h.bf16 %v4287_v50 }
 0x4fe   :  { %4397 = vrcp.f32 %v1649_v36 }
 0x500   :  { %v4390_v17 = vpop.eup %4389 }
 0x501   :  { %v1646_v44 = vpop.xlane.xlu0 %1645  ;;  %v1759_v57 = vmul.f32 %v4390_v17, %v5297_v10 }
 0x502   :  { %4399 = vrcp.f32 %v1646_v44  ;;  %v4263_v44 = vunpack.i.l.bf16 %v5273_v33 }
 0x503   :  { %v4392_v45 = vpop.eup %4391 }
 0x504   :  { %v4394_v23 = vpop.eup %4393  ;;  %v1755_v18 = vmul.f32 %v4392_v45, %v5299_v15  ;;  %v4288_v15 = vunpack.i.l.bf16 %v4287_v50 }
 0x505   :  { %v1758_v22 = vmul.f32 %v4394_v23, %v5303_v37  ;;  %v4049_v37 = vpack.c.bf16 %v4259_v26, %v4258_v20 }
 0x506   :  { %3774 = vmatmul.mubr.msk.f32.vlgmr.msra.gmra.mrb[20].mxu0 %vm1433_vm3, %v1755_v18  ;;  %v4057_v24 = vpack.c.bf16 %v4289_v27, %v4288_v15 }
 0x507   :  { %v4396_v58 = vpop.eup %4395  ;;  %4036 = vmatpush3.bf16.msra.mxu0 %v5082_v4  ;;  %3776 = vmatprep.mubr.msk.f32.mxu0 %vm1433_vm3, %v1756_v63  ;;  %v4273_v63 = vunpack.i.l.bf16 %v5277_v2 }
 0x508   :  { %3787 = vmatprep.mubr.msk.f32.mxu1 %vm1433_vm3, %v1758_v22  ;;  %4038 = vmatprep.subr.bf16.mxu0 %v4037_v12  ;;  %v1757_v7 = vmul.f32 %v4396_v58, %v5307_v1  ;;  %v4398_v10 = vpop.eup %4397  ;;  %v4294_v22 = vunpack.i.h.bf16 %v5445_v28 }
 0x509   :  { %3788 = vmatmul.mubr.msk.f32.vlgmr.msra.gmra.mrb[28].mxu1 %vm1433_vm3, %v1759_v57  ;;  %v1761_v1 = vmul.f32 %v4398_v10, %v5311_v39  ;;  %v4264_v39 = vunpack.i.h.bf16 %v5273_v33  ;;  %v4293_v33 = vunpack.i.l.bf16 %v5445_v28  ;;  %v4065_v2 = vpack.c.bf16 %v4274_v13, %v4273_v63 }
 0x50a   :  { %4044 = vmatpush3.bf16.msra.mxu1 %v5095_v35  ;;  %3777 = vmatmul.mubr.msk.f32.gmra.mrb[22].mxu0 %vm1433_vm3, %v1757_v7 }
 0x50b   :  { %4046 = vmatprep.subr.bf16.mxu1 %v4045_v3  ;;  %4040 = vmatpush3.bf16.msra.mxu0 %v4037_v12  ;;  %v4053_v18 = vpack.c.bf16 %v4264_v39, %v4263_v44  ;;  %v4061_v57 = vpack.c.bf16 %v4294_v22, %v4293_v33 }
 0x50c   :  { %v4400_v4 = vpop.eup %4399  ;;  %4050 = vmatprep.subr.bf16.mxu0 %v4049_v37 }
 0x50d   :  { %v1760_v0 = vmul.f32 %v4400_v4, %v5317_v30 }
 0x50e   :  { %4048 = vmatpush3.bf16.msra.mxu1 %v4045_v3 }
 0x50f   :  { %4058 = vmatprep.subr.bf16.mxu1 %v4057_v24  ;;  %3790 = vmatprep.mubr.msk.f32.mxu1 %vm1433_vm3, %v1760_v0 }
 0x510   :  { %3791 = vmatmul.mubr.msk.f32.gmra.mrb[30].mxu1 %vm1433_vm3, %v1761_v1  ;;  %v4284_v1 = vunpack.i.h.bf16 %v5280_v38 }
 0x525   :  { %v1655_v50 = vpop.xlane.xlu1 %1654 }
 0x526   :  { %4401 = vrcp.f32 %v1655_v50 }
 0x529   :  { %v1661_v34 = vpop.xlane.xlu1 %1660 }
 0x530   :  { %v4402_v5 = vpop.eup %4401 }
 0x531   :  { %v1667_v35 = vpop.xlane.xlu0 %1666  ;;  %v1763_v19 = vmul.f32 %v4402_v5, %v5324_v61 }
 0x535   :  { %v1652_v29 = vpop.xlane.xlu0 %1651 }
 0x536   :  { %4403 = vrcp.f32 %v1652_v29  ;;  %v1673_v30 = vpop.xlane.xlu1 %1672 }
 0x537   :  { %4405 = vrcp.f32 %v1667_v35  ;;  %v4283_v35 = vunpack.i.l.bf16 %v5280_v38 }
 0x539   :  { %v1664_v14 = vpop.xlane.xlu0 %1663  ;;  %v4069_v38 = vpack.c.bf16 %v4284_v1, %v4283_v35 }
 0x53a   :  { %4407 = vrcp.f32 %v1664_v14 }
 0x53b   :  { %4409 = vrcp.f32 %v1661_v34 }
 0x53d   :  { %v1658_v36 = vpop.xlane.xlu0 %1657 }
 0x53e   :  { %4411 = vrcp.f32 %v1658_v36 }
 0x53f   :  { %4413 = vrcp.f32 %v1673_v30 }
 0x540   :  { %v4404_v17 = vpop.eup %4403 }
 0x541   :  { %v1762_v56 = vmul.f32 %v4404_v17, %v5342_v25  ;;  %v1670_v45 = vpop.xlane.xlu1 %1669  ;;  %v4406_v23 = vpop.eup %4405 }
 0x542   :  { %4415 = vrcp.f32 %v1670_v45  ;;  %v1767_v26 = vmul.f32 %v4406_v23, %v5336_v43 }
 0x543   :  { %3801 = vmatprep.mubr.msk.f32.mxu0 %vm1433_vm3, %v1762_v56 }
 0x544   :  { %v4408_v59 = vpop.eup %4407  ;;  %3802 = vmatmul.mubr.msk.f32.vlgmr.msra.gmra.mrb[24].mxu0 %vm1433_vm3, %v1763_v19 }
 0x545   :  { %4052 = vmatpush3.bf16.msra.mxu0 %v4049_v37  ;;  %v1691_v61 = vpop.xlane.xlu0 %1690  ;;  %v1766_v25 = vmul.f32 %v4408_v59, %v5352_v55  ;;  %v1679_v20 = vpop.xlane.xlu1 %1678 }
 0x546   :  { %4054 = vmatprep.subr.bf16.mxu0 %v4053_v18  ;;  %v4410_v12 = vpop.eup %4409  ;;  %4417 = vrcp.f32 %v1691_v61 }
 0x547   :  { %3815 = vmatprep.mubr.msk.f32.mxu1 %vm1433_vm3, %v1766_v25  ;;  %4419 = vrcp.f32 %v1679_v20  ;;  %v1765_v43 = vmul.f32 %v4410_v12, %v5330_v60 }
 0x548   :  { %v4412_v58 = vpop.eup %4411  ;;  %3816 = vmatmul.mubr.msk.f32.vlgmr.msra.gmra.mrb[32].mxu1 %vm1433_vm3, %v1767_v26 }
 0x549   :  { %4056 = vmatpush3.bf16.msra.mxu0 %v4053_v18  ;;  %4060 = vmatpush3.bf16.msra.mxu1 %v4057_v24  ;;  %v1688_v28 = vpop.xlane.xlu0 %1687  ;;  %v1764_v7 = vmul.f32 %v4412_v58, %v5358_v11  ;;  %v1676_v55 = vpop.xlane.xlu1 %1675 }
 0x54a   :  { %4066 = vmatprep.subr.bf16.mxu0 %v4065_v2  ;;  %4421 = vrcp.f32 %v1688_v28  ;;  %4062 = vmatprep.subr.bf16.mxu1 %v4061_v57  ;;  %v4414_v27 = vpop.eup %4413 }
 0x54b   :  { %4423 = vrcp.f32 %v1676_v55  ;;  %3804 = vmatprep.mubr.msk.f32.mxu0 %vm1433_vm3, %v1764_v7  ;;  %v1769_v10 = vmul.f32 %v4414_v27, %v5344_v21 }
 0x54c   :  { %3805 = vmatmul.mubr.msk.f32.gmra.mrb[26].mxu0 %vm1433_vm3, %v1765_v43  ;;  %v4416_v15 = vpop.eup %4415 }
 0x54d   :  { %4064 = vmatpush3.bf16.msra.mxu1 %v4061_v57  ;;  %v1685_v3 = vpop.xlane.xlu1 %1684  ;;  %v1768_v37 = vmul.f32 %v4416_v15, %v5363_v54 }
 0x54e   :  { %4425 = vrcp.f32 %v1685_v3 }
 0x54f   :  { %3818 = vmatprep.mubr.msk.f32.mxu1 %vm1433_vm3, %v1768_v37 }
 0x550   :  { %3819 = vmatmul.mubr.msk.f32.gmra.mrb[34].mxu1 %vm1433_vm3, %v1769_v10  ;;  %v4418_v11 = vpop.eup %4417 }
 0x551   :  { %v1697_v4 = vpop.xlane.xlu1 %1696  ;;  %v4420_v60 = vpop.eup %4419  ;;  %v1775_v54 = vmul.f32 %v4418_v11, %v5371_v8 }
 0x552   :  { %v1712_v50 = vpop.xlane.xlu0 %1711  ;;  %v1771_v34 = vmul.f32 %v4420_v60, %v5368_v41 }
 0x554   :  { %v4422_v24 = vpop.eup %4421 }
 0x555   :  { %v4424_v0 = vpop.eup %4423  ;;  %v1774_v29 = vmul.f32 %v4422_v24, %v5380_v51  ;;  %v1682_v21 = vpop.xlane.xlu1 %1681 }
 0x556   :  { %v1770_v14 = vmul.f32 %v4424_v0, %v5378_v31  ;;  %4427 = vrcp.f32 %v1682_v21 }
 0x557   :  { %3843 = vmatprep.mubr.msk.f32.mxu1 %vm1433_vm3, %v1774_v29  ;;  %4429 = vrcp.f32 %v1697_v4 }
 0x558   :  { %3829 = vmatprep.mubr.msk.f32.mxu0 %vm1433_vm3, %v1770_v14  ;;  %3844 = vmatmul.mubr.msk.f32.vlgmr.msra.gmra.mrb[36].mxu1 %vm1433_vm3, %v1775_v54  ;;  %4431 = vrcp.f32 %v1712_v50  ;;  %v4426_v36 = vpop.eup %4425  ;;  %v2683_v14 = vld [vmem:[%s5946_s5] sm:$0xff] }
 0x559   :  { %3830 = vmatmul.mubr.msk.f32.vlgmr.msra.gmra.mrb[28].mxu0 %vm1433_vm3, %v1771_v34  ;;  %v1694_v8 = vpop.xlane.xlu1 %1693  ;;  %v1773_v45 = vmul.f32 %v4426_v36, %v5389_v47  ;;  %v2684_v34 = vld [vmem:[%s5946_s5 + $0x8] sm:$0xff] }
 0x55a   :  { %v1709_v51 = vpop.xlane.xlu0 %1708  ;;  %4068 = vmatpush3.bf16.msra.mxu0 %v4065_v2  ;;  %4433 = vrcp.f32 %v1694_v8  ;;  %v2686_v8 = vld [vmem:[%s5946_s5 + $0x18] sm:$0xff]  ;;  %v2688_v36 = vld [vmem:[%s5946_s5 + $0x28] sm:$0xff] }
 0x55b   :  { %4070 = vmatprep.subr.bf16.mxu0 %v4069_v38 }
 0x55d   :  { %v1703_v41 = vpop.xlane.xlu1 %1702 }
 0x55e   :  { %v1718_v31 = vpop.xlane.xlu0 %1717  ;;  %4072 = vmatpush3.bf16.msra.mxu0 %v4069_v38  ;;  %4435 = vrcp.f32 %v1703_v41  ;;  %v2685_v38 = vld [vmem:[%s5946_s5 + $0x10] sm:$0xff]  ;;  %v2687_v41 = vld [vmem:[%s5946_s5 + $0x20] sm:$0xff] }
 0x560   :  { %v4428_v30 = vpop.eup %4427 }
 0x561   :  { %v1715_v39 = vpop.xlane.xlu1 %1714  ;;  %v1772_v56 = vmul.f32 %v4428_v30, %v5403_v42  ;;  %v4430_v19 = vpop.eup %4429  ;;  %v4089_v30 = vpack.c.bf16 %v2688_v36, %v2687_v41 }
 0x562   :  { %v4297_v5 = vpop.permute.xlu0 %4296  ;;  %v4432_v23 = vpop.eup %4431  ;;  %v1777_v22 = vmul.f32 %v4430_v19, %v5392_v49 }
 0x563   :  { %v4299_v44 = vunpack.i.h.bf16 %v4297_v5  ;;  %v4298_v17 = vunpack.i.l.bf16 %v4297_v5  ;;  %3832 = vmatprep.mubr.msk.f32.mxu0 %vm1433_vm3, %v1772_v56  ;;  %v1782_v47 = vmul.f32 %v4432_v23, %v5396_v32  ;;  %v2689_v5 = vld [vmem:[%s5946_s5 + $0x30] sm:$0xff] }
 0x564   :  { %v4434_v59 = vpop.eup %4433  ;;  %3833 = vmatmul.mubr.msk.f32.gmra.mrb[30].mxu0 %vm1433_vm3, %v1773_v45 }
 0x565   :  { %v4073_v18 = vpack.c.bf16 %v4299_v44, %v4298_v17  ;;  %v1700_v13 = vpop.xlane.xlu1 %1699  ;;  %v1776_v63 = vmul.f32 %v4434_v59, %v5408_v6 }
 0x566   :  { %4437 = vrcp.f32 %v1700_v13 }
 0x567   :  { %4074 = vmatprep.subr.bf16.mxu1 %v4073_v18  ;;  %3846 = vmatprep.mubr.msk.f32.mxu1 %vm1433_vm3, %v1776_v63  ;;  %4439 = vrcp.f32 %v1715_v39  ;;  %v2690_v39 = vld [vmem:[%s5946_s5 + $0x38] sm:$0xff] }
 0x568   :  { %4076 = vmatpush3.bf16.msra.mxu1 %v4073_v18  ;;  %4441 = vrcp.f32 %v1718_v31  ;;  %v4436_v61 = vpop.eup %4435  ;;  %v4085_v31 = vpack.c.bf16 %v2686_v8, %v2685_v38  ;;  %v4093_v44 = vpack.c.bf16 %v2690_v39, %v2689_v5 }
 0x569   :  { %3847 = vmatmul.mubr.msk.f32.gmra.mrb[38].mxu1 %vm1433_vm3, %v1777_v22  ;;  %v1721_v42 = vpop.xlane.xlu1 %1720  ;;  %4443 = vrcp.f32 %v1709_v51  ;;  %v1779_v26 = vmul.f32 %v4436_v61, %v5419_v40  ;;  %v4081_v51 = vpack.c.bf16 %v2684_v34, %v2683_v14 }
 0x56a   :  { %3871 = vmatprep.mubr.msk.f32.mxu1 %vm1433_vm3, %v1782_v47 }
 0x56b   :  { %4082 = vmatprep.subr.bf16.mxu0 %v4081_v51 }
 0x56d   :  { %v1706_v33 = vpop.xlane.xlu1 %1705 }
 0x56e   :  { %4445 = vrcp.f32 %v1706_v33 }
 0x56f   :  { %4447 = vrcp.f32 %v1721_v42 }
 0x570   :  { %v4438_v6 = vpop.eup %4437 }
 0x571   :  { %v4302_v25 = vpop.permute.xlu1 %4301  ;;  %v1778_v49 = vmul.f32 %v4438_v6, %v5429_v9  ;;  %v4440_v58 = vpop.eup %4439 }
 0x572   :  { %v4304_v20 = vunpack.i.h.bf16 %v4302_v25  ;;  %v4303_v32 = vunpack.i.l.bf16 %v4302_v25  ;;  %v4442_v57 = vpop.eup %4441  ;;  %v1783_v7 = vmul.f32 %v4440_v58, %v5425_v62 }
 0x573   :  { %3857 = vmatprep.mubr.msk.f32.mxu0 %vm1433_vm3, %v1778_v49  ;;  %v4444_v2 = vpop.eup %4443  ;;  %v1784_v40 = vmul.f32 %v4442_v57, %v5415_v52 }
 0x574   :  { %v4077_v12 = vpack.c.bf16 %v4304_v20, %v4303_v32  ;;  %3858 = vmatmul.mubr.msk.f32.vlgmr.msra.gmra.mrb[32].mxu0 %vm1433_vm3, %v1779_v26  ;;  %v1781_v43 = vmul.f32 %v4444_v2, %v5410_v46 }
 0x575   :  { %4084 = vmatpush3.bf16.msra.mxu0 %v4081_v51 }
 0x576   :  { %4078 = vmatprep.subr.bf16.mxu1 %v4077_v12  ;;  %4086 = vmatprep.subr.bf16.mxu0 %v4085_v31 }
 0x577   :  { %4080 = vmatpush3.bf16.msra.mxu1 %v4077_v12 }
 0x578   :  { %v4446_v28 = vpop.eup %4445 }
 0x579   :  { %v4448_v55 = vpop.eup %4447  ;;  %v1780_v9 = vmul.f32 %v4446_v28, %v5437_v48  ;;  %4088 = vmatpush3.bf16.msra.mxu0 %v4085_v31 }
 0x57a   :  { %3872 = vmatmul.mubr.msk.f32.vlgmr.msra.gmra.mrb[40].mxu1 %vm1433_vm3, %v1783_v7  ;;  %v1785_v27 = vmul.f32 %v4448_v55, %v5433_v53  ;;  %4090 = vmatprep.subr.bf16.mxu0 %v4089_v30 }
 0x57b   :  { %3860 = vmatprep.mubr.msk.f32.mxu0 %vm1433_vm3, %v1780_v9  ;;  %3874 = vmatprep.mubr.msk.f32.mxu1 %vm1433_vm3, %v1784_v40 }
 0x57c   :  { %3861 = vmatmul.mubr.msk.f32.gmra.mrb[34].mxu0 %vm1433_vm3, %v1781_v43 }
 0x57d   :  { %4092 = vmatpush3.bf16.msra.mxu0 %v4089_v30 }
 0x57e   :  { %3875 = vmatmul.mubr.msk.f32.gmra.mrb[42].mxu1 %vm1433_vm3, %v1785_v27  ;;  %4094 = vmatprep.subr.bf16.mxu0 %v4093_v44 }
 0x57f   :  { %3085 = vmatprep.mubr.f32.mxu1 %v4524_v16 }
 0x581   :  { %4096 = vmatpush3.bf16.msra.mxu0 %v4093_v44 }
 0x5d9   :  { %v5528_v62 = vpop.f32.mrb[20].mxu0 }
 0x5da   :  { %v5530_v48 = vpop.f32.mrb[21].mxu0 }
 0x5dc   :  { %v5532_v52 = vpop.f32.mrb[28].mxu1 }
 0x5dd   :  { %v5534_v15 = vpop.f32.mrb[29].mxu1  ;;  %v5536_v46 = vpop.f32.mrb[22].mxu0 }
 0x5de   :  { %v5538_v3 = vpop.f32.mrb[23].mxu0 }
 0x5e3   :  { %v5540_v37 = vpop.f32.mrb[30].mxu1 }
 0x5e4   :  { %v5542_v10 = vpop.f32.mrb[31].mxu1 }
 0x617   :  { %v3803_v53 = vpop.f32.mrb[24].mxu0 }
 0x618   :  { %2572 = vrot.lane.b32.xlu1 %v3803_v53, %s4529_s28  ;;  %v2058_v11 = vpop.f32.mrb[25].mxu0 }
 0x619   :  { %2570 = vrot.lane.b32.xlu0 %v2058_v11, %s4529_s28 }
 0x61b   :  { %v3817_v4 = vpop.f32.mrb[32].mxu1 }
 0x61c   :  { %2580 = vrot.lane.b32.xlu1 %v3817_v4, %s4529_s28  ;;  %v2155_v60 = vpop.f32.mrb[33].mxu1 }
 0x61d   :  { %2578 = vrot.lane.b32.xlu0 %v2155_v60, %s4529_s28 }
 0x61f   :  { %v3806_v24 = vpop.f32.mrb[26].mxu0 }
 0x620   :  { %2576 = vrot.lane.b32.xlu1 %v3806_v24, %s4529_s28  ;;  %v2068_v0 = vpop.f32.mrb[27].mxu0 }
 0x621   :  { %2574 = vrot.lane.b32.xlu0 %v2068_v0, %s4529_s28 }
 0x623   :  { %v3820_v1 = vpop.f32.mrb[34].mxu1 }
 0x624   :  { %v2165_v35 = vpop.f32.mrb[35].mxu1 }
 0x62b   :  { %v3845_v50 = vpop.f32.mrb[36].mxu1 }
 0x62c   :  { %v3831_v29 = vpop.f32.mrb[28].mxu0  ;;  %v2349_v54 = vpop.f32.mrb[37].mxu1 }
 0x62d   :  { %2604 = vrot.lane.b32.xlu1 %v3831_v29, %s4530_s1  ;;  %v2252_v21 = vpop.f32.mrb[29].mxu0 }
 0x62e   :  { %2602 = vrot.lane.b32.xlu0 %v2252_v21, %s4530_s1 }
 0x637   :  { %v3834_v17 = vpop.f32.mrb[30].mxu0 }
 0x638   :  { %2608 = vrot.lane.b32.xlu1 %v3834_v17, %s4530_s1  ;;  %v2262_v56 = vpop.f32.mrb[31].mxu0 }
 0x639   :  { %2606 = vrot.lane.b32.xlu0 %v2262_v56, %s4530_s1 }
 0x63c   :  { %v3848_v19 = vpop.f32.mrb[38].mxu1 }
 0x63d   :  { %v2359_v45 = vpop.f32.mrb[39].mxu1 }
 0x647   :  { %v3859_v23 = vpop.f32.mrb[32].mxu0 }
 0x648   :  { %2636 = vrot.lane.b32.xlu1 %v3859_v23, %s4531_s27  ;;  %v2446_v18 = vpop.f32.mrb[33].mxu0  ;;  %v4466_v23 = vld [vmem:[%s5941_s0] sm:$0xff] }
 0x649   :  { %2634 = vrot.lane.b32.xlu0 %v2446_v18, %s4531_s27 }
 0x64c   :  { %2612 = vrot.lane.b32.xlu1 %v3845_v50, %s4530_s1 }
 0x64d   :  { %2610 = vrot.lane.b32.xlu0 %v2349_v54, %s4530_s1  ;;  %v3873_v59 = vpop.f32.mrb[40].mxu1 }
 0x64e   :  { %v2543_v13 = vpop.f32.mrb[41].mxu1 }
 0x64f   :  { %v3862_v63 = vpop.f32.mrb[34].mxu0 }
 0x650   :  { %v2456_v22 = vpop.f32.mrb[35].mxu0  ;;  %2640 = vrot.lane.b32.xlu1 %v3862_v63, %s4531_s27 }
 0x651   :  { %2638 = vrot.lane.b32.xlu0 %v2456_v22, %s4531_s27  ;;  %v3876_v47 = vpop.f32.mrb[42].mxu1 }
 0x652   :  { %v2553_v42 = vpop.f32.mrb[43].mxu1 }
 0x654   :  { %2644 = vrot.lane.b32.xlu1 %v3873_v59, %s4531_s27 }
 0x655   :  { %2642 = vrot.lane.b32.xlu0 %v2543_v13, %s4531_s27 }
 0x658   :  { %2584 = vrot.lane.b32.xlu1 %v3820_v1, %s4529_s28 }
 0x659   :  { %2582 = vrot.lane.b32.xlu0 %v2165_v35, %s4529_s28 }
 0x65c   :  { %2616 = vrot.lane.b32.xlu1 %v3848_v19, %s4530_s1  ;;  %v4465_v19 = vld [vmem:[%s5941_s0 + $0x8] sm:$0xff] }
 0x65d   :  { %2614 = vrot.lane.b32.xlu0 %v2359_v45, %s4530_s1 }
 0x660   :  { %2648 = vrot.lane.b32.xlu1 %v3876_v47, %s4531_s27 }
 0x661   :  { %2646 = vrot.lane.b32.xlu0 %v2553_v42, %s4531_s27 }
 0x68a   :  { %v2573_v33 = vpop.permute.xlu1 %2572 }
 0x68b   :  { %v2571_v61 = vpop.permute.xlu0 %2570  ;;  %v2659_v28 = vsel %vm500_vm1, %v5528_v62, %v2573_v33  ;;  %v4467_v33 = vld [vmem:[%s5941_s0 + $0x10] sm:$0xff] }
 0x68c   :  { %v2658_v57 = vsel %vm500_vm1, %v5530_v48, %v2571_v61 }
 0x68e   :  { %v2581_v6 = vpop.permute.xlu1 %2580 }
 0x68f   :  { %v2579_v25 = vpop.permute.xlu0 %2578 }
 0x690   :  { %v2662_v35 = vsel %vm500_vm1, %v5534_v15, %v2579_v25 }
 0x692   :  { %v2577_v49 = vpop.permute.xlu1 %2576 }
 0x693   :  { %v2575_v26 = vpop.permute.xlu0 %2574  ;;  %v2661_v62 = vsel %vm500_vm1, %v5536_v46, %v2577_v49  ;;  %v2663_v46 = vsel %vm500_vm1, %v5532_v52, %v2581_v6 }
 0x694   :  { %v2660_v48 = vsel %vm500_vm1, %v5538_v3, %v2575_v26  ;;  %v4468_v26 = vld [vmem:[%s5941_s0 + $0x18] sm:$0xff] }
 0x69f   :  { %v2605_v20 = vpop.permute.xlu1 %2604 }
 0x6a0   :  { %v2603_v32 = vpop.permute.xlu0 %2602  ;;  %v2667_v9 = vsel %vm1433_vm3, %v2659_v28, %v2605_v20  ;;  %v4470_v28 = vld [vmem:[%s5941_s0 + $0x20] sm:$0xff] }
 0x6a1   :  { %v2666_v7 = vsel %vm1433_vm3, %v2658_v57, %v2603_v32 }
 0x6aa   :  { %v2609_v12 = vpop.permute.xlu1 %2608 }
 0x6ab   :  { %v2607_v58 = vpop.permute.xlu0 %2606  ;;  %v2669_v24 = vsel %vm1433_vm3, %v2661_v62, %v2609_v12  ;;  %v4472_v62 = vld [vmem:[%s5941_s0 + $0x30] sm:$0xff] }
 0x6ac   :  { %v2668_v4 = vsel %vm1433_vm3, %v2660_v48, %v2607_v58  ;;  %v4469_v58 = vld [vmem:[%s5941_s0 + $0x28] sm:$0xff]  ;;  %v4471_v48 = vld [vmem:[%s5941_s0 + $0x38] sm:$0xff] }
 0x6ba   :  { %v2637_v2 = vpop.permute.xlu1 %2636 }
 0x6bb   :  { %v2635_v55 = vpop.permute.xlu0 %2634  ;;  %v2676_v43 = vsel %vm2674_vm4, %v2667_v9, %v2637_v2 }
 0x6bc   :  { %v2675_v40 = vsel %vm2674_vm4, %v2666_v7, %v2635_v55 }
 0x6bd   :  { %3893 = vmatprep.mubr.msk.f32.mxu0 %vm69_vm0, %v2675_v40 }
 0x6be   :  { %3894 = vmatmul.mubr.msk.f32.vlgmr.msra.gmra.mrb[36].mxu0 %vm69_vm0, %v2676_v43  ;;  %v2613_v27 = vpop.permute.xlu1 %2612 }
 0x6bf   :  { %v2611_v53 = vpop.permute.xlu0 %2610  ;;  %v2671_v54 = vsel %vm1433_vm3, %v2663_v46, %v2613_v27 }
 0x6c0   :  { %v2670_v50 = vsel %vm1433_vm3, %v2662_v35, %v2611_v53 }
 0x6c2   :  { %v2641_v11 = vpop.permute.xlu1 %2640 }
 0x6c3   :  { %v2639_v60 = vpop.permute.xlu0 %2638  ;;  %v2678_v1 = vsel %vm2674_vm4, %v2669_v24, %v2641_v11 }
 0x6c4   :  { %v2677_v0 = vsel %vm2674_vm4, %v2668_v4, %v2639_v60 }
 0x6c5   :  { %3896 = vmatprep.mubr.msk.f32.mxu0 %vm69_vm0, %v2677_v0 }
 0x6c6   :  { %3897 = vmatmul.mubr.msk.f32.gmra.mrb[38].mxu0 %vm69_vm0, %v2678_v1  ;;  %v2645_v3 = vpop.permute.xlu1 %2644 }
 0x6c7   :  { %v2643_v29 = vpop.permute.xlu0 %2642  ;;  %v2680_v14 = vsel %vm2674_vm4, %v2671_v54, %v2645_v3 }
 0x6c8   :  { %v2679_v21 = vsel %vm2674_vm4, %v2670_v50, %v2643_v29 }
 0x6c9   :  { %3899 = vmatprep.mubr.msk.f32.mxu0 %vm69_vm0, %v2679_v21 }
 0x6ca   :  { %v2585_v34 = vpop.permute.xlu1 %2584  ;;  %3900 = vmatmul.mubr.msk.f32.gmra.mrb[40].mxu0 %vm69_vm0, %v2680_v14 }
 0x6cb   :  { %v2583_v15 = vpop.permute.xlu0 %2582  ;;  %v2665_v31 = vsel %vm500_vm1, %v5540_v37, %v2585_v34 }
 0x6cc   :  { %v2664_v52 = vsel %vm500_vm1, %v5542_v10, %v2583_v15  ;;  %v3433_v10 = vld [vmem:[%s5947_s6] ss:$0 sm:$0xff] }
 0x6ce   :  { %v2617_v38 = vpop.permute.xlu1 %2616 }
 0x6cf   :  { %v2615_v51 = vpop.permute.xlu0 %2614  ;;  %v2673_v30 = vsel %vm1433_vm3, %v2665_v31, %v2617_v38 }
 0x6d0   :  { %v2672_v41 = vsel %vm1433_vm3, %v2664_v52, %v2615_v51 }
 0x6d2   :  { %v2649_v8 = vpop.permute.xlu1 %2648 }
 0x6d3   :  { %v2647_v36 = vpop.permute.xlu0 %2646  ;;  %v2682_v39 = vsel %vm2674_vm4, %v2673_v30, %v2649_v8 }
 0x6d4   :  { %v2681_v5 = vsel %vm2674_vm4, %v2672_v41, %v2647_v36 }
 0x6d5   :  { %3902 = vmatprep.mubr.msk.f32.mxu0 %vm69_vm0, %v2681_v5 }
 0x6d6   :  { %3903 = vmatmul.mubr.msk.f32.gmra.mrb[42].mxu0 %vm69_vm0, %v2682_v39 }
 0x791   :  { %v3895_v44 = vpop.f32.mrb[36].mxu0 }
 0x792   :  { %v2794_v17 = vadd.f32 %v3895_v44, %v3433_v10  ;;  %v2788_v37 = vpop.f32.mrb[37].mxu0 }
 0x793   :  { %v2789_v56 = vadd.f32 %v3433_v10, %v2788_v37 }
 0x794   :  { %v5630_v45 = vadd.f32 %v4465_v19, %v2794_v17 }
 0x795   :  { %v5635_v18 = vadd.f32 %v4466_v23, %v2789_v56 }
 0x796   :  { %v2840_v59 = vsel %vm69_vm0, %v5630_v45, 0.0 }
 0x797   :  { %2841 = vadd.xlane.f32.xlu1 %v2840_v59  ;;  %v2837_v13 = vsel %vm69_vm0, %v5635_v18, 0.0 }
 0x798   :  { %2838 = vadd.xlane.f32.xlu0 %v2837_v13 }
 0x799   :  { %v3898_v63 = vpop.f32.mrb[38].mxu0 }
 0x79a   :  { %v2798_v22 = vpop.f32.mrb[39].mxu0  ;;  %v2804_v47 = vadd.f32 %v3898_v63, %v3433_v10 }
 0x79b   :  { %v2799_v42 = vadd.f32 %v3433_v10, %v2798_v22 }
 0x79c   :  { %v5649_v20 = vadd.f32 %v4468_v26, %v2804_v47 }
 0x79d   :  { %v5644_v61 = vadd.f32 %v4467_v33, %v2799_v42  ;;  %v3901_v6 = vpop.f32.mrb[40].mxu0  ;;  %v2970_v42 = vld [vmem:[%s5950_s9 + $0x8] sm:$0xff] }
 0x79e   :  { %v2814_v25 = vadd.f32 %v3901_v6, %v3433_v10  ;;  %v2808_v49 = vpop.f32.mrb[41].mxu0  ;;  %v2846_v55 = vsel %vm69_vm0, %v5649_v20, 0.0  ;;  %v2972_v6 = vld [vmem:[%s5950_s9 + $0x18] sm:$0xff] }
 0x79f   :  { %v2809_v32 = vadd.f32 %v3433_v10, %v2808_v49  ;;  %v2843_v12 = vsel %vm69_vm0, %v5644_v61, 0.0  ;;  %v2971_v49 = vld [vmem:[%s5950_s9 + $0x10] sm:$0xff] }
 0x7a0   :  { %v5656_v57 = vadd.f32 %v4469_v58, %v2814_v25  ;;  %2844 = vadd.xlane.f32.xlu0 %v2843_v12  ;;  %v2969_v25 = vld [vmem:[%s5950_s9] sm:$0xff] }
 0x7a1   :  { %v5663_v7 = vadd.f32 %v4470_v28, %v2809_v32  ;;  %v4097_v32 = vpack.c.bf16 %v2972_v6, %v2970_v42  ;;  %v4099_v12 = vpack.c.bf16 %v2971_v49, %v2969_v25  ;;  %v2974_v28 = vld [vmem:[%s5950_s9 + $0x28] sm:$0xff]  ;;  %v3156_v25 = vld [vmem:[%s5952_s11 + $0x30] sm:$0xff]  ;;  %v3157_v49 = vld [vmem:[%s5952_s11 + $0x38] sm:$0xff] }
 0x7a2   :  { %v2852_v2 = vsel %vm69_vm0, %v5656_v57, 0.0 }
 0x7a3   :  { %2853 = vadd.xlane.f32.xlu1 %v2852_v2  ;;  %v2849_v9 = vsel %vm69_vm0, %v5663_v7, 0.0  ;;  %4098 = vmatprep.subr.bf16.mxu1 %v4097_v32  ;;  %v3174_v32 = vld [vmem:[%s5952_s11 + $0xc0] sm:$0xff] }
 0x7a4   :  { %2847 = vadd.xlane.f32.xlu0 %v2846_v55  ;;  %v2976_v55 = vld [vmem:[%s5950_s9 + $0x38] sm:$0xff]  ;;  %4100 = vmatpush1.bf16.msra.mxu1 %v4099_v12  ;;  %v3175_v12 = vld [vmem:[%s5952_s11 + $0xc8] sm:$0xff] }
 0x7a8   :  { %2850 = vadd.xlane.f32.xlu0 %v2849_v9 }
 0x7a9   :  { %v3904_v40 = vpop.f32.mrb[42].mxu0 }
 0x7aa   :  { %v2824_v43 = vadd.f32 %v3904_v40, %v3433_v10  ;;  %v2818_v27 = vpop.f32.mrb[43].mxu0  ;;  %v4101_v40 = vpack.c.bf16 %v2976_v55, %v2974_v28  ;;  %v3158_v28 = vld [vmem:[%s5952_s11 + $0x40] sm:$0xff]  ;;  %v3159_v55 = vld [vmem:[%s5952_s11 + $0x48] sm:$0xff] }
 0x7ab   :  { %v2819_v53 = vadd.f32 %v3433_v10, %v2818_v27  ;;  %v2975_v27 = vld [vmem:[%s5950_s9 + $0x30] sm:$0xff] }
 0x7ac   :  { %v5672_v11 = vadd.f32 %v4471_v48, %v2824_v43  ;;  %v2973_v43 = vld [vmem:[%s5950_s9 + $0x20] sm:$0xff]  ;;  %4102 = vmatprep.subr.bf16.mxu1 %v4101_v40  ;;  %v3177_v40 = vld [vmem:[%s5952_s11 + $0xd8] sm:$0xff] }
 0x7ad   :  { %v5677_v4 = vadd.f32 %v4472_v62, %v2819_v53  ;;  %v4103_v48 = vpack.c.bf16 %v2975_v27, %v2973_v43  ;;  %v2978_v62 = vld [vmem:[%s5950_s9 + $0x48] sm:$0xff]  ;;  %v4131_v43 = vpack.c.bf16 %v3159_v55, %v3158_v28 }
 0x7ae   :  { %v2858_v60 = vsel %vm69_vm0, %v5672_v11, 0.0 }
 0x7af   :  { %2859 = vadd.xlane.f32.xlu1 %v2858_v60  ;;  %v2855_v24 = vsel %vm69_vm0, %v5677_v4, 0.0  ;;  %v2980_v60 = vld [vmem:[%s5950_s9 + $0x58] sm:$0xff]  ;;  %4104 = vmatpush1.bf16.msra.mxu1 %v4103_v48 }
 0x7b0   :  { %2856 = vadd.xlane.f32.xlu0 %v2855_v24  ;;  %v4105_v24 = vpack.c.bf16 %v2980_v60, %v2978_v62  ;;  %v3161_v48 = vld [vmem:[%s5952_s11 + $0x58] sm:$0xff]  ;;  %v3178_v62 = vld [vmem:[%s5952_s11 + $0xe0] sm:$0xff]  ;;  %v3179_v60 = vld [vmem:[%s5952_s11 + $0xe8] sm:$0xff] }
 0x7b2   :  { %4106 = vmatprep.subr.bf16.mxu1 %v4105_v24 }
 0x824   :  { %v2842_v0 = vpop.xlane.xlu1 %2841 }
 0x825   :  { %v2862_v1 = vmul.f32 0.015625, %v2842_v0  ;;  %v2839_v35 = vpop.xlane.xlu0 %2838  ;;  %v2977_v0 = vld [vmem:[%s5950_s9 + $0x40] sm:$0xff] }
 0x826   :  { %v2861_v3 = vmul.f32 0.015625, %v2839_v35 }
 0x827   :  { %v5684_v46 = vsub.f32 %v5630_v45, %v2862_v1  ;;  %v2979_v1 = vld [vmem:[%s5950_s9 + $0x50] sm:$0xff] }
 0x828   :  { %v5687_v50 = vsub.f32 %v5635_v18, %v2861_v3  ;;  %v4107_v35 = vpack.c.bf16 %v2979_v1, %v2977_v0  ;;  %v2982_v3 = vld [vmem:[%s5950_s9 + $0x68] sm:$0xff]  ;;  %v4137_v0 = vpack.c.bf16 %v3179_v60, %v3178_v62 }
 0x829   :  { %v2878_v29 = vmul.f32 %v5684_v46, %v5684_v46 }
 0x82a   :  { %v2877_v54 = vmul.f32 %v5687_v50, %v5687_v50  ;;  %4108 = vmatpush1.bf16.msra.mxu1 %v4107_v35 }
 0x82b   :  { %v2888_v21 = vsel %vm69_vm0, %v2878_v29, 0.0  ;;  %v2984_v29 = vld [vmem:[%s5950_s9 + $0x78] sm:$0xff] }
 0x82c   :  { %2889 = vadd.xlane.f32.xlu1 %v2888_v21  ;;  %v2885_v14 = vsel %vm69_vm0, %v2877_v54, 0.0  ;;  %v4109_v54 = vpack.c.bf16 %v2984_v29, %v2982_v3  ;;  %v2981_v21 = vld [vmem:[%s5950_s9 + $0x60] sm:$0xff] }
 0x82d   :  { %2886 = vadd.xlane.f32.xlu0 %v2885_v14  ;;  %v2845_v34 = vpop.xlane.xlu0 %2844  ;;  %v2983_v14 = vld [vmem:[%s5950_s9 + $0x70] sm:$0xff] }
 0x82e   :  { %v2863_v15 = vmul.f32 0.015625, %v2845_v34  ;;  %v4111_v34 = vpack.c.bf16 %v2983_v14, %v2981_v21  ;;  %4110 = vmatprep.subr.bf16.mxu1 %v4109_v54 }
 0x830   :  { %v5696_v38 = vsub.f32 %v5644_v61, %v2863_v15  ;;  %v2854_v51 = vpop.xlane.xlu1 %2853  ;;  %4112 = vmatpush1.bf16.msra.mxu1 %v4111_v34  ;;  %v3166_v15 = vld [vmem:[%s5952_s11 + $0x80] sm:$0xff] }
 0x831   :  { %v2866_v52 = vmul.f32 0.015625, %v2854_v51  ;;  %v2848_v8 = vpop.xlane.xlu0 %2847  ;;  %v3167_v51 = vld [vmem:[%s5952_s11 + $0x88] sm:$0xff] }
 0x832   :  { %v2864_v31 = vmul.f32 0.015625, %v2848_v8  ;;  %v2879_v41 = vmul.f32 %v5696_v38, %v5696_v38  ;;  %v4113_v8 = vpack.c.bf16 %v3167_v51, %v3166_v15 }
 0x833   :  { %v5701_v36 = vsub.f32 %v5656_v57, %v2866_v52  ;;  %v3150_v52 = vld [vmem:[%s5952_s11] sm:$0xff] }
 0x834   :  { %v5704_v30 = vsub.f32 %v5649_v20, %v2864_v31  ;;  %v2891_v5 = vsel %vm69_vm0, %v2879_v41, 0.0  ;;  %v3151_v31 = vld [vmem:[%s5952_s11 + $0x8] sm:$0xff]  ;;  %v3168_v41 = vld [vmem:[%s5952_s11 + $0x90] sm:$0xff]  ;;  %4114 = vmatprep.subr.bf16.mxu0 %v4113_v8 }
 0x835   :  { %2892 = vadd.xlane.f32.xlu0 %v2891_v5  ;;  %v2851_v39 = vpop.xlane.xlu0 %2850  ;;  %v2882_v56 = vmul.f32 %v5701_v36, %v5701_v36  ;;  %v3169_v5 = vld [vmem:[%s5952_s11 + $0x98] sm:$0xff] }
 0x836   :  { %v2865_v10 = vmul.f32 0.015625, %v2851_v39  ;;  %v2880_v44 = vmul.f32 %v5704_v30, %v5704_v30  ;;  %v4115_v39 = vpack.c.bf16 %v3151_v31, %v3150_v52 }
 0x837   :  { %v2900_v59 = vsel %vm69_vm0, %v2882_v56, 0.0  ;;  %v3170_v56 = vld [vmem:[%s5952_s11 + $0xa0] sm:$0xff] }
 0x838   :  { %v5710_v17 = vsub.f32 %v5663_v7, %v2865_v10  ;;  %v2894_v37 = vsel %vm69_vm0, %v2880_v44, 0.0  ;;  %v4117_v10 = vpack.c.bf16 %v3169_v5, %v3168_v41  ;;  %v3152_v44 = vld [vmem:[%s5952_s11 + $0x10] sm:$0xff]  ;;  %4116 = vmatpush3.bf16.msra.mxu0 %v4115_v39  ;;  %v3442_v41 = vld [vmem:[%s5948_s7] ss:$0 sm:$0xff] }
 0x839   :  { %2895 = vadd.xlane.f32.xlu1 %v2894_v37  ;;  %v3153_v37 = vld [vmem:[%s5952_s11 + $0x18] sm:$0xff] }
 0x83a   :  { %v2881_v19 = vmul.f32 %v5710_v17, %v5710_v17  ;;  %4118 = vmatprep.subr.bf16.mxu0 %v4117_v10 }
 0x83c   :  { %v2860_v23 = vpop.xlane.xlu1 %2859  ;;  %v2897_v13 = vsel %vm69_vm0, %v2881_v19, 0.0  ;;  %v3171_v19 = vld [vmem:[%s5952_s11 + $0xa8] sm:$0xff] }
 0x83d   :  { %v2868_v63 = vmul.f32 0.015625, %v2860_v23  ;;  %2901 = vadd.xlane.f32.xlu1 %v2900_v59  ;;  %2898 = vadd.xlane.f32.xlu0 %v2897_v13  ;;  %v2857_v22 = vpop.xlane.xlu0 %2856  ;;  %v4119_v23 = vpack.c.bf16 %v3153_v37, %v3152_v44  ;;  %v4121_v59 = vpack.c.bf16 %v3171_v19, %v3170_v56  ;;  %v3154_v13 = vld [vmem:[%s5952_s11 + $0x20] sm:$0xff] }
 0x83e   :  { %v2867_v47 = vmul.f32 0.015625, %v2857_v22  ;;  %v3172_v22 = vld [vmem:[%s5952_s11 + $0xb0] sm:$0xff]  ;;  %v3443_v56 = vld [vmem:[%s5949_s8] ss:$0 sm:$0xff] }
 0x83f   :  { %v5723_v33 = vsub.f32 %v5672_v11, %v2868_v63  ;;  %v3155_v63 = vld [vmem:[%s5952_s11 + $0x28] sm:$0xff]  ;;  %4120 = vmatpush3.bf16.msra.mxu0 %v4119_v23 }
 0x840   :  { %v5735_v26 = vsub.f32 %v5677_v4, %v2867_v47  ;;  %v3173_v47 = vld [vmem:[%s5952_s11 + $0xb8] sm:$0xff]  ;;  %v4123_v42 = vpack.c.bf16 %v3155_v63, %v3154_v13  ;;  %4122 = vmatprep.subr.bf16.mxu0 %v4121_v59 }
 0x841   :  { %v2884_v58 = vmul.f32 %v5723_v33, %v5723_v33  ;;  %v4125_v6 = vpack.c.bf16 %v3173_v47, %v3172_v22 }
 0x842   :  { %v2883_v2 = vmul.f32 %v5735_v26, %v5735_v26 }
 0x843   :  { %v2906_v9 = vsel %vm69_vm0, %v2884_v58, 0.0  ;;  %4124 = vmatpush3.bf16.msra.mxu0 %v4123_v42  ;;  %v4127_v58 = vpack.c.bf16 %v3157_v49, %v3156_v25 }
 0x844   :  { %2907 = vadd.xlane.f32.xlu1 %v2906_v9  ;;  %v2903_v53 = vsel %vm69_vm0, %v2883_v2, 0.0  ;;  %4126 = vmatprep.subr.bf16.mxu0 %v4125_v6  ;;  %v4129_v2 = vpack.c.bf16 %v3175_v12, %v3174_v32  ;;  %v3176_v9 = vld [vmem:[%s5952_s11 + $0xd0] sm:$0xff] }
 0x845   :  { %2904 = vadd.xlane.f32.xlu0 %v2903_v53  ;;  %v4133_v27 = vpack.c.bf16 %v3177_v40, %v3176_v9  ;;  %v3160_v53 = vld [vmem:[%s5952_s11 + $0x50] sm:$0xff] }
 0x846   :  { %v4135_v24 = vpack.c.bf16 %v3161_v48, %v3160_v53 }
 0x847   :  { %4128 = vmatpush3.bf16.msra.mxu0 %v4127_v58 }
 0x848   :  { %4130 = vmatprep.subr.bf16.mxu0 %v4129_v2 }
 0x84b   :  { %4132 = vmatpush3.bf16.msra.mxu0 %v4131_v43 }
 0x84c   :  { %4134 = vmatprep.subr.bf16.mxu0 %v4133_v27 }
 0x84f   :  { %4136 = vmatpush3.bf16.msra.mxu0 %v4135_v24 }
 0x850   :  { %4138 = vmatprep.subr.bf16.mxu0 %v4137_v0 }
 0x8b9   :  { %v2890_v1 = vpop.xlane.xlu1 %2889 }
 0x8ba   :  { %v2910_v35 = vmul.f32 0.015625, %v2890_v1  ;;  %v2887_v3 = vpop.xlane.xlu0 %2886 }
 0x8bb   :  { %v2909_v29 = vmul.f32 0.015625, %v2887_v3 }
 0x8bc   :  { %v2918_v54 = vadd.f32 1e-05, %v2910_v35 }
 0x8bd   :  { %v2917_v21 = vadd.f32 1e-05, %v2909_v29 }
 0x8be   :  { %4449 = vrsqrt.f32 %v2918_v54 }
 0x8bf   :  { %4451 = vrsqrt.f32 %v2917_v21 }
 0x8c2   :  { %v2893_v14 = vpop.xlane.xlu0 %2892 }
 0x8c3   :  { %v2911_v34 = vmul.f32 0.015625, %v2893_v14  ;;  %v3180_v14 = vld [vmem:[%s5952_s11 + $0xf0] sm:$0xff] }
 0x8c5   :  { %v2919_v15 = vadd.f32 1e-05, %v2911_v34 }
 0x8c6   :  { %v2896_v51 = vpop.xlane.xlu1 %2895 }
 0x8c7   :  { %4453 = vrsqrt.f32 %v2919_v15  ;;  %v2912_v52 = vmul.f32 0.015625, %v2896_v51  ;;  %v3164_v15 = vld [vmem:[%s5952_s11 + $0x70] sm:$0xff]  ;;  %v3165_v51 = vld [vmem:[%s5952_s11 + $0x78] sm:$0xff] }
 0x8c8   :  { %v4450_v8 = vpop.eup %4449 }
 0x8c9   :  { %v4452_v31 = vpop.eup %4451  ;;  %v2920_v5 = vadd.f32 1e-05, %v2912_v52  ;;  %v2934_v37 = vmul.f32 %v4450_v8, %v5684_v46  ;;  %v4143_v52 = vpack.c.bf16 %v3165_v51, %v3164_v15  ;;  %v2987_v8 = vlaneseq }
 0x8ca   :  { %v2933_v39 = vmul.f32 %v4452_v31, %v5687_v50  ;;  %v2902_v10 = vpop.xlane.xlu1 %2901  ;;  %v2899_v44 = vpop.xlane.xlu0 %2898 }
 0x8cb   :  { %4455 = vrsqrt.f32 %v2920_v5  ;;  %v2914_v19 = vmul.f32 0.015625, %v2902_v10  ;;  %v2913_v23 = vmul.f32 0.015625, %v2899_v44  ;;  %v2948_v47 = vmul.f32 %v3442_v41, %v2934_v37  ;;  %v2985_v5 = vld [vmem:[%s5951_s10] sm:$0x3] }
 0x8cc   :  { %v2947_v59 = vmul.f32 %v3442_v41, %v2933_v39  ;;  %v2988_v31 = vshrl.u32 %v2987_v8, 7  ;;  %v3452_v8 = vld [vmem:[%s5953_s12] ss:$0 sm:$0xff]  ;;  %s4532_s12 = smov [#allocation5]  }
 0x8cd   :  { %v2922_v13 = vadd.f32 1e-05, %v2914_v19  ;;  %v2921_v63 = vadd.f32 1e-05, %v2913_v23  ;;  %v2962_v25 = vadd.f32 %v3443_v56, %v2948_v47  ;;  %s3315_s30 = sshll.u32 %s4532_s12, 4  ;;  %s3316_s30 = int_to_ptr.vmem [resolvable:$true] %s3315_s30 }
 0x8ce   :  { %v2961_v22 = vadd.f32 %v3443_v56, %v2947_v59  ;;  %v2993_v39 = vsub.s32 1, %v2988_v31  ;;  %s4495_s6 = scalar_lea.vmem %s3316_s30, 1024  ;;  %p4500_p9 = scmp.lt.s32.totalorder %s3316_s30, %s3316_s30 }
 0x8cf   :  { %4457 = vrsqrt.f32 %v2922_v13  ;;  %p4496_p8 = scmp.ne.s32.totalorder %s3316_s30, %s4495_s6  ;;  %p4501_p10 = scmp.lt.s32.totalorder %s4495_s6, %s4495_s6 }
 0x8d0   :  { %4459 = vrsqrt.f32 %v2921_v63  ;;  %3444 = vmatmul.mubr.msk.f32.vlgmr.msra.gmra.mrb[44].mxu1 %vm69_vm0, %v2961_v22  ;;  %v2994_v44 = vrot.slane %v2985_v5, %v2993_v39 }
 0x8d1   :  { %v4454_v50 = vpop.eup %4453  ;;  %v2908_v42 = vpop.xlane.xlu1 %2907  ;;  %3091 = vmatprep.mubr.f32.mxu1 %v4524_v16  ;;  %p4502_p11 = por %p4501_p10, %p4500_p9 }
 0x8d2   :  { %v2916_v46 = vmul.f32 0.015625, %v2908_v42  ;;  %v2905_v6 = vpop.xlane.xlu0 %2904  ;;  %v2935_v49 = vmul.f32 %v4454_v50, %v5696_v38 }
 0x8d3   :  { %v2915_v32 = vmul.f32 0.015625, %v2905_v6  ;;  %p4503_p12 = pnand %p4502_p11, %p4496_p8 }
 0x8d4   :  { %v2924_v12 = vadd.f32 1e-05, %v2916_v46  ;;  %3445 = vmatmul.mubr.msk.f32.gmra.mrb[46].mxu1 %vm69_vm0, %v2962_v25  ;;  %v2949_v58 = vmul.f32 %v3442_v41, %v2935_v49 }
 0x8d5   :  { %v4456_v2 = vpop.eup %4455  ;;  %v2923_v28 = vadd.f32 1e-05, %v2915_v32  ;;  %3097 = vmatprep.mubr.f32.mxu1 %v4524_v16 }
 0x8d6   :  { %4461 = vrsqrt.f32 %v2924_v12  ;;  %v2963_v55 = vadd.f32 %v3443_v56, %v2949_v58  ;;  %v2936_v9 = vmul.f32 %v4456_v2, %v5704_v30 }
 0x8d7   :  { %4463 = vrsqrt.f32 %v2923_v28 }
 0x8d8   :  { %3446 = vmatmul.mubr.msk.f32.gmra.mrb[48].mxu1 %vm69_vm0, %v2963_v55  ;;  %v2950_v40 = vmul.f32 %v3442_v41, %v2936_v9 }
 0x8d9   :  { %v4458_v43 = vpop.eup %4457  ;;  %3103 = vmatprep.mubr.f32.mxu1 %v4524_v16 }
 0x8da   :  { %v4460_v38 = vpop.eup %4459  ;;  %v2964_v27 = vadd.f32 %v3443_v56, %v2950_v40  ;;  %v2938_v48 = vmul.f32 %v4458_v43, %v5701_v36 }
 0x8db   :  { %v2937_v53 = vmul.f32 %v4460_v38, %v5710_v17 }
 0x8dc   :  { %3447 = vmatmul.mubr.msk.f32.gmra.mrb[50].mxu1 %vm69_vm0, %v2964_v27  ;;  %v2952_v30 = vmul.f32 %v3442_v41, %v2938_v48 }
 0x8dd   :  { %3109 = vmatprep.mubr.f32.mxu1 %v4524_v16  ;;  %v2951_v62 = vmul.f32 %v3442_v41, %v2937_v53 }
 0x8de   :  { %v2966_v35 = vadd.f32 %v3443_v56, %v2952_v30 }
 0x8df   :  { %v2965_v60 = vadd.f32 %v3443_v56, %v2951_v62 }
 0x8e0   :  { %v4462_v24 = vpop.eup %4461 }
 0x8e1   :  { %v4464_v0 = vpop.eup %4463  ;;  %3448 = vmatmul.mubr.msk.f32.gmra.mrb[52].mxu1 %vm69_vm0, %v2965_v60  ;;  %v2940_v17 = vmul.f32 %v4462_v24, %v5723_v33  ;;  %v3163_v33 = vld [vmem:[%s5952_s11 + $0x68] sm:$0xff] }
 0x8e2   :  { %3115 = vmatprep.mubr.f32.mxu1 %v4524_v16  ;;  %v2939_v1 = vmul.f32 %v4464_v0, %v5735_v26  ;;  %v3162_v26 = vld [vmem:[%s5952_s11 + $0x60] sm:$0xff] }
 0x8e3   :  { %v2954_v29 = vmul.f32 %v3442_v41, %v2940_v17  ;;  %v4139_v21 = vpack.c.bf16 %v3163_v33, %v3162_v26 }
 0x8e4   :  { %v2953_v3 = vmul.f32 %v3442_v41, %v2939_v1  ;;  %v2989_v41 = vsub.s32 0, %v2988_v31 }
 0x8e5   :  { %3449 = vmatmul.mubr.msk.f32.gmra.mrb[54].mxu1 %vm69_vm0, %v2966_v35  ;;  %v2968_v54 = vadd.f32 %v3443_v56, %v2954_v29  ;;  %4140 = vmatpush3.bf16.msra.mxu0 %v4139_v21 }
 0x8e6   :  { %3121 = vmatprep.mubr.f32.mxu1 %v4524_v16  ;;  %v2967_v36 = vadd.f32 %v3443_v56, %v2953_v3  ;;  %v2990_v10 = vrot.slane %v2985_v5, %v2989_v41 }
 0x8e9   :  { %3450 = vmatmul.mubr.msk.f32.gmra.mrb[56].mxu1 %vm69_vm0, %v2967_v36 }
 0x8ea   :  { %3127 = vmatprep.mubr.f32.mxu1 %v4524_v16  ;;  %v3181_v16 = vld [vmem:[%s5952_s11 + $0xf8] sm:$0xff] }
 0x8eb   :  { %v4141_v34 = vpack.c.bf16 %v3181_v16, %v3180_v14 }
 0x8ed   :  { %3451 = vmatmul.mubr.msk.f32.gmra.mrb[58].mxu1 %vm69_vm0, %v2968_v54  ;;  %4142 = vmatprep.subr.bf16.mxu0 %v4141_v34 }
 0x8ee   :  { %4144 = vmatpush3.bf16.msra.mxu0 %v4143_v52 }
 0x9a3   :  { %v3087_v37 = vpop.f32.mrb[44].mxu1 }
 0x9a4   :  { %v3088_v56 = vadd.f32 %v3087_v37, %v2990_v10  ;;  %v3089_v19 = vpop.f32.mrb[45].mxu1 }
 0x9a5   :  { %v3090_v23 = vadd.f32 %v3089_v19, %v2994_v44 }
 0x9a6   :  { %v3134_v63 = vmax.f32 %v3088_v56, 0.0 }
 0x9a7   :  { %v3135_v59 = vmax.f32 %v3090_v23, 0.0  ;;  %v3093_v13 = vpop.f32.mrb[46].mxu1 }
 0x9a8   :  { %v3094_v22 = vadd.f32 %v3093_v13, %v2990_v10  ;;  %v3095_v47 = vpop.f32.mrb[47].mxu1 }
 0x9a9   :  { %v3096_v50 = vadd.f32 %v3095_v47, %v2994_v44  ;;  %3253 = vmatprep.mubr.f32.mxu0 %v3135_v59 }
 0x9aa   :  { %3254 = vmatmul.mubr.f32.vlgmr.msra.gmra.mrb[44].mxu0 %v3134_v63  ;;  %v3136_v6 = vmax.f32 %v3094_v22, 0.0 }
 0x9ab   :  { %v3137_v42 = vmax.f32 %v3096_v50, 0.0  ;;  %v3099_v46 = vpop.f32.mrb[48].mxu1 }
 0x9ac   :  { %v3100_v25 = vadd.f32 %v3099_v46, %v2990_v10  ;;  %v3101_v49 = vpop.f32.mrb[49].mxu1 }
 0x9ad   :  { %v3102_v32 = vadd.f32 %v3101_v49, %v2994_v44  ;;  %3258 = vmatprep.mubr.f32.mxu0 %v3137_v42 }
 0x9ae   :  { %3259 = vmatmul.mubr.f32.gmra.mrb[46].mxu0 %v3136_v6  ;;  %v3138_v2 = vmax.f32 %v3100_v25, 0.0 }
 0x9af   :  { %v3139_v12 = vmax.f32 %v3102_v32, 0.0  ;;  %v3105_v58 = vpop.f32.mrb[50].mxu1 }
 0x9b0   :  { %v3106_v28 = vadd.f32 %v3105_v58, %v2990_v10  ;;  %v3107_v55 = vpop.f32.mrb[51].mxu1 }
 0x9b1   :  { %v3108_v9 = vadd.f32 %v3107_v55, %v2994_v44  ;;  %3263 = vmatprep.mubr.f32.mxu0 %v3139_v12 }
 0x9b2   :  { %3264 = vmatmul.mubr.f32.gmra.mrb[48].mxu0 %v3138_v2  ;;  %v3140_v43 = vmax.f32 %v3106_v28, 0.0 }
 0x9b3   :  { %v3141_v40 = vmax.f32 %v3108_v9, 0.0 }
 0x9b4   :  { %v3111_v38 = vpop.f32.mrb[52].mxu1 }
 0x9b5   :  { %v3112_v27 = vadd.f32 %v3111_v38, %v2990_v10  ;;  %v3113_v53 = vpop.f32.mrb[53].mxu1  ;;  %3268 = vmatprep.mubr.f32.mxu0 %v3141_v40 }
 0x9b6   :  { %v3114_v48 = vadd.f32 %v3113_v53, %v2994_v44  ;;  %3269 = vmatmul.mubr.f32.gmra.mrb[50].mxu0 %v3140_v43 }
 0x9b7   :  { %v3142_v30 = vmax.f32 %v3112_v27, 0.0 }
 0x9b8   :  { %v3143_v62 = vmax.f32 %v3114_v48, 0.0  ;;  %v3117_v60 = vpop.f32.mrb[54].mxu1 }
 0x9b9   :  { %v3118_v24 = vadd.f32 %v3117_v60, %v2990_v10  ;;  %v3119_v0 = vpop.f32.mrb[55].mxu1 }
 0x9ba   :  { %v3120_v1 = vadd.f32 %v3119_v0, %v2994_v44  ;;  %3273 = vmatprep.mubr.f32.mxu0 %v3143_v62 }
 0x9bb   :  { %3274 = vmatmul.mubr.f32.gmra.mrb[52].mxu0 %v3142_v30  ;;  %v3144_v3 = vmax.f32 %v3118_v24, 0.0 }
 0x9bc   :  { %v3145_v35 = vmax.f32 %v3120_v1, 0.0  ;;  %v3123_v17 = vpop.f32.mrb[56].mxu1 }
 0x9bd   :  { %v3124_v36 = vadd.f32 %v3123_v17, %v2990_v10  ;;  %v3125_v29 = vpop.f32.mrb[57].mxu1 }
 0x9be   :  { %v3126_v54 = vadd.f32 %v3125_v29, %v2994_v44  ;;  %3278 = vmatprep.mubr.f32.mxu0 %v3145_v35 }
 0x9bf   :  { %3279 = vmatmul.mubr.f32.gmra.mrb[54].mxu0 %v3144_v3  ;;  %v3146_v21 = vmax.f32 %v3124_v36, 0.0 }
 0x9c0   :  { %v3147_v26 = vmax.f32 %v3126_v54, 0.0  ;;  %v3129_v33 = vpop.f32.mrb[58].mxu1 }
 0x9c1   :  { %v3130_v14 = vadd.f32 %v3129_v33, %v2990_v10  ;;  %v3131_v16 = vpop.f32.mrb[59].mxu1 }
 0x9c2   :  { %v3132_v34 = vadd.f32 %v3131_v16, %v2994_v44  ;;  %3283 = vmatprep.mubr.f32.mxu0 %v3147_v26 }
 0x9c3   :  { %3284 = vmatmul.mubr.f32.gmra.mrb[56].mxu0 %v3146_v21  ;;  %v3148_v51 = vmax.f32 %v3130_v14, 0.0 }
 0x9c4   :  { %v3149_v15 = vmax.f32 %v3132_v34, 0.0 }
 0x9c6   :  { %3288 = vmatprep.mubr.f32.mxu0 %v3149_v15 }
 0x9c7   :  { %3289 = vmatmul.mubr.f32.gmra.mrb[58].mxu0 %v3148_v51 }
 0xa7d   :  { %v3629_v52 = vpop.f32.mrb[44].mxu0 }
 0xa7e   :  { %v3630_v31 = vpop.f32.mrb[45].mxu0 }
 0xa7f   :  { %v3631_v41 = vadd.f32 %v3630_v31, %v3629_v52 }
 0xa81   :  { %v3256_v5 = vadd.f32 %v3631_v41, %v3452_v8  ;;  %v3632_v39 = vpop.f32.mrb[46].mxu0 }
 0xa82   :  { %v3633_v37 = vpop.f32.mrb[47].mxu0 }
 0xa83   :  { %v3294_v10 = vadd.f32 %v3256_v5, %v5635_v18  ;;  %v3634_v56 = vadd.f32 %v3633_v37, %v3632_v39 }
 0xa85   :  { %3302 = vst.msk [vmem:[#allocation5] sm:$0xff] %vm69_vm0, %v3294_v10  ;;  %v3261_v44 = vadd.f32 %v3634_v56, %v3452_v8  ;;  %v3635_v19 = vpop.f32.mrb[48].mxu0 }
 0xa86   :  { %v3636_v23 = vpop.f32.mrb[49].mxu0 }
 0xa87   :  { %v3295_v59 = vadd.f32 %v3261_v44, %v5630_v45  ;;  %v3637_v13 = vadd.f32 %v3636_v23, %v3635_v19 }
 0xa89   :  { %3303 = vst.msk [vmem:[#allocation5 + $0x8] sm:$0xff] %vm69_vm0, %v3295_v59  ;;  %v3266_v63 = vadd.f32 %v3637_v13, %v3452_v8  ;;  %v3638_v22 = vpop.f32.mrb[50].mxu0 }
 0xa8a   :  { %v3639_v47 = vpop.f32.mrb[51].mxu0 }
 0xa8b   :  { %v3296_v50 = vadd.f32 %v3266_v63, %v5644_v61  ;;  %v3640_v42 = vadd.f32 %v3639_v47, %v3638_v22 }
 0xa8d   :  { %3304 = vst.msk [vmem:[#allocation5 + $0x10] sm:$0xff] %vm69_vm0, %v3296_v50  ;;  %v3271_v18 = vadd.f32 %v3640_v42, %v3452_v8 }
 0xa8e   :  { %v3641_v46 = vpop.f32.mrb[52].mxu0 }
 0xa8f   :  { %v3297_v6 = vadd.f32 %v3271_v18, %v5649_v20  ;;  %v3642_v25 = vpop.f32.mrb[53].mxu0 }
 0xa90   :  { %v3643_v49 = vadd.f32 %v3642_v25, %v3641_v46 }
 0xa91   :  { %3305 = vst.msk [vmem:[#allocation5 + $0x18] sm:$0xff] %vm69_vm0, %v3297_v6 }
 0xa92   :  { %v3276_v45 = vadd.f32 %v3643_v49, %v3452_v8  ;;  %v3644_v32 = vpop.f32.mrb[54].mxu0 }
 0xa93   :  { %v3645_v12 = vpop.f32.mrb[55].mxu0 }
 0xa94   :  { %v3298_v58 = vadd.f32 %v3276_v45, %v5663_v7  ;;  %v3646_v2 = vadd.f32 %v3645_v12, %v3644_v32 }
 0xa96   :  { %3306 = vst.msk [vmem:[#allocation5 + $0x20] sm:$0xff] %vm69_vm0, %v3298_v58  ;;  %v3281_v61 = vadd.f32 %v3646_v2, %v3452_v8  ;;  %v3647_v28 = vpop.f32.mrb[56].mxu0 }
 0xa97   :  { %v3648_v55 = vpop.f32.mrb[57].mxu0 }
 0xa98   :  { %v3299_v9 = vadd.f32 %v3281_v61, %v5656_v57  ;;  %v3649_v40 = vadd.f32 %v3648_v55, %v3647_v28 }
 0xa9a   :  { %3307 = vst.msk [vmem:[#allocation5 + $0x28] sm:$0xff] %vm69_vm0, %v3299_v9  ;;  %v3286_v20 = vadd.f32 %v3649_v40, %v3452_v8  ;;  %v3650_v43 = vpop.f32.mrb[58].mxu0 }
 0xa9b   :  { %v3651_v38 = vpop.f32.mrb[59].mxu0 }
 0xa9c   :  { %v3300_v27 = vadd.f32 %v3286_v20, %v5677_v4  ;;  %v3652_v53 = vadd.f32 %v3651_v38, %v3650_v43 }
 0xa9e   :  { %3308 = vst.msk [vmem:[#allocation5 + $0x30] sm:$0xff] %vm69_vm0, %v3300_v27  ;;  %v3291_v7 = vadd.f32 %v3652_v53, %v3452_v8 }
 0xaa0   :  { %v3301_v48 = vadd.f32 %v3291_v7, %v5672_v11 }
 0xaa2   :  { %3309 = vst.msk [vmem:[#allocation5 + $0x38] sm:$0xff] %vm69_vm0, %v3301_v48 }
 0xaa3   :  { %4506 = shalt.err (!%p4503_p12)
}
 0xaa4   :  { %s4507_s16 = scalar_lea.hbm %s5954_s13, 1024 }
 0xaa5   :  { %p4508_p13 = scmp.ne.s32.totalorder %s5954_s13, %s4507_s16  ;;  %p4511_p0 = scmp.lt.u32.totalorder %s4507_s16, %s5954_s13 }
 0xaa7   :  { %p4513_p1 = pnand %p4511_p0, %p4508_p13 }
 0xaa9   :  { %4516 = shalt.err (!%p4513_p1)
}
 0xaaa   :  { %3321 = dma.vmem_to_hbm [thread:$0]  %s3316_s30, 1024, %s5954_s13, [#allocation4], %s4522_s18, %s4522_s18, %s4523_s19  }
 0xaab   :  { %4519 = dma.done.wait [#allocation4], 1024  }
 0xaac   :  { %4520 = vsyncadd [#allocation4], 4294966272 }
 0xaad   :  { %3325 = vsyncpa [#allocation3], 1 }
 0xaae   :  { %3326 = vsyncpa [#allocation4], 1 }

</bundles_post_ra>
